<compile_context>
chip_gen: v7x
topology: tpu7x:2x2x1
jax: 0.10.0
libtpu: 0.0.40
codegen_flags: <defaults>
</compile_context>

<pallas_src>
import jax
import jax.numpy as jnp
from jax.experimental import pallas as pl
from jax.experimental.pallas import tpu as pltpu

# ---------------- small-but-structurally-faithful configuration ------------
Z = 16                     # z_dimension
HID = 32                   # temporal-network hidden channels
HF = 32                    # bar-generator hidden features
BH = HID // 2              # bar-generator hidden channels (=16)
C2C = BH // 2              # bar-generator second-half channels (=8)
OUT_CH = 1
T = 4                      # n_tracks
NB = 2                     # n_bars
STEPS = 16                 # n_steps_per_bar
NP = 84                    # n_pitches = KW4 * KW5
KW4, KW5 = 7, 12
S0 = HF // BH              # spatial positions produced by the Linear (=2)
PPAD = 128                 # pitches padded to a lane-dense 128
BN_EPS = 1e-5

assert NP == KW4 * KW5
assert NB == 2 and S0 == 2 and STEPS == S0 * 8

# ----- derived lane widths / packed-slab layout (shared by wrapper & kernel)
NNET = 1 + T               # chords + per-track melody temporal nets (=5)
ZIN_W = NNET * Z           # 80
SG_W = Z + T * Z           # 80   (style + groove)
ACT_ZIN = NB * ZIN_W       # 160  (bar-blocked z lanes)
ACT_SG0 = ACT_ZIN          # 160
ACT_M0 = ACT_SG0 + SG_W    # 240  (two 0/1 row-mask lanes live here)
ACT_W = 256                # activation slab lane width (padded)

T1_W = NNET * HID          # 160
T2_W = NNET * Z            # 80
LIN_W = T * BH             # 64
C1_W = T * BH              # 64
C2_W = T * C2C             # 32
C4_W = T * KW4 * C2C       # 224
C5_W = T * PPAD            # 512

W160_WT1 = 0               # (ACT_W, T1_W)
W160_WT2 = ACT_W           # (T1_W, T2_W), padded to T1_W cols
W512_WC5 = 0               # (C4_W, C5_W)
W512_WC4 = C4_W            # (C2_W, C4_W), padded to C5_W cols
W512_SH0 = C4_W + C2_W     # 16 shift rows start here
W64_A0 = 0
W64_A1 = T2_W
W64_B0 = 2 * T2_W
W64_B1 = W64_B0 + ACT_W
W64_W1T0 = W64_B1 + ACT_W
W64_W1T1 = W64_W1T0 + C1_W
W32_W2T0 = 0
W32_W2T1 = C1_W
W32_W3T0 = 2 * C1_W
W32_W3T1 = 2 * C1_W + C2_W

SH_T1, SH_T2, SH_L0, SH_L1, SH_C1, SH_C2, SH_C3, SH_C4, SH_C5 = range(9)


# ---------------------------- the Pallas kernel -----------------------------
def _muse_kernel(acts_ref, w512_ref, w160_ref, w64_ref, w32_ref, o_ref):
    """Whole MuseGenerator forward.  Activation rows are (s0, bar, b) at the
    start and grow to (k3, k2, k1, s0, bar, b) via aligned row concats; lanes
    hold (track, channel[, w/pitch]) throughout.  14 matmuls total."""

    def mm(x, w):
        return jnp.dot(x, w, preferred_element_type=jnp.float32)

    def relu(x):
        return jnp.maximum(x, 0.0)

    def shift(i, n):
        return w512_ref[W512_SH0 + i:W512_SH0 + i + 1, :n]   # (1, n)

    acts = acts_ref[...]                                      # (NR, 256)

    # ---- temporal networks (chords + 4 melody), both bars: 2 matmuls total
    t1 = relu(mm(acts, w160_ref[W160_WT1:W160_WT1 + ACT_W, :]) + shift(SH_T1, T1_W))
    t2 = relu(mm(t1, w160_ref[W160_WT2:W160_WT2 + T1_W, :T2_W]) + shift(SH_T2, T2_W))

    # ---- BarGenerator Linear(4Z->HF)+BN+ReLU; per-s0 weights selected by mask
    m0 = acts[:, ACT_M0:ACT_M0 + 1]
    m1 = acts[:, ACT_M0 + 1:ACT_M0 + 2]
    lin0 = (mm(t2, w64_ref[W64_A0:W64_A0 + T2_W, :])
            + mm(acts, w64_ref[W64_B0:W64_B0 + ACT_W, :]) + shift(SH_L0, LIN_W))
    lin1 = (mm(t2, w64_ref[W64_A1:W64_A1 + T2_W, :])
            + mm(acts, w64_ref[W64_B1:W64_B1 + ACT_W, :]) + shift(SH_L1, LIN_W))
    h = relu(m0 * lin0 + m1 * lin1)                           # (NR, 64): (track, c16)

    # ---- ConvTranspose (2,1) x3: one matmul per tap, block-diag over track;
    #      new spatial factor prepended to rows (aligned >=8-row concats).
    def convT2(x, wa, wb, sh):
        return relu(jnp.concatenate([mm(x, wa), mm(x, wb)], axis=0) + sh)

    h = convT2(h, w64_ref[W64_W1T0:W64_W1T0 + C1_W, :],
               w64_ref[W64_W1T1:W64_W1T1 + C1_W, :], shift(SH_C1, C1_W))
    h = convT2(h, w32_ref[W32_W2T0:W32_W2T0 + C1_W, :],
               w32_ref[W32_W2T1:W32_W2T1 + C1_W, :], shift(SH_C2, C2_W))
    h = convT2(h, w32_ref[W32_W3T0:W32_W3T0 + C2_W, :],
               w32_ref[W32_W3T1:W32_W3T1 + C2_W, :], shift(SH_C3, C2_W))

    # ---- ConvTranspose (1,7) then (1,12): lanes (track, w, c) -> (track, pitch)
    h = relu(mm(h, w512_ref[W512_WC4:W512_WC4 + C2_W, :C4_W]) + shift(SH_C4, C4_W))
    o_ref[...] = mm(h, w512_ref[W512_WC5:W512_WC5 + C4_W, :]) + shift(SH_C5, C5_W)


# ------------------------- parameter initialisation ------------------------
def _init_conv(key, cin, cout, kh, kw):
    k_w, k_b = jax.random.split(key)
    return {"W": jax.random.normal(k_w, (cin, cout, kh, kw), jnp.float32) * 0.1,
            "b": jax.random.normal(k_b, (cout,), jnp.float32) * 0.05}


def _init_bn(key, c):
    k_g, k_b = jax.random.split(key)
    return {"gamma": 1.0 + 0.1 * jax.random.normal(k_g, (c,), jnp.float32),
            "beta": 0.05 * jax.random.normal(k_b, (c,), jnp.float32)}


def init_temporal_params(key):
    k1, k2, k3, k4 = jax.random.split(key, 4)
    return {"conv1": _init_conv(k1, Z, HID, 2, 1),
            "bn1": _init_bn(k2, HID),
            "conv2": _init_conv(k3, HID, Z, NB - 1, 1),
            "bn2": _init_bn(k4, Z)}


def init_bar_params(key):
    ks = jax.random.split(key, 12)
    return {"lin": {"W": jax.random.normal(ks[0], (4 * Z, HF), jnp.float32) * 0.1,
                    "b": jax.random.normal(ks[1], (HF,), jnp.float32) * 0.05},
            "bn0": _init_bn(ks[2], HF),
            "conv1": _init_conv(ks[3], BH, BH, 2, 1),
            "bn1": _init_bn(ks[4], BH),
            "conv2": _init_conv(ks[5], BH, C2C, 2, 1),
            "bn2": _init_bn(ks[6], C2C),
            "conv3": _init_conv(ks[7], C2C, C2C, 2, 1),
            "bn3": _init_bn(ks[8], C2C),
            "conv4": _init_conv(ks[9], C2C, C2C, 1, KW4),
            "bn4": _init_bn(ks[10], C2C),
            "conv5": _init_conv(ks[11], C2C, OUT_CH, 1, KW5)}


def init_params(key):
    kc, km, kb = jax.random.split(key, 3)
    return {"chords": init_temporal_params(kc),
            "melody": [init_temporal_params(k) for k in jax.random.split(km, T)],
            "bars": [init_bar_params(k) for k in jax.random.split(kb, T)]}


# ---------------- trace-time weight folding / packing ----------------------
def _fold_bn(bias, bn):
    """Fold conv/linear bias + eval-mode BN (running_mean=0, running_var=1)."""
    if bn is None:
        return jnp.ones_like(bias), bias
    s = bn["gamma"] / jnp.sqrt(1.0 + BN_EPS)
    return s, bn["beta"] + bias * s


def _pack_weights(params):
    f32 = jnp.float32

    # ---- temporal nets (chords + 4 melody), bar/net block-structured
    WT1 = jnp.zeros((ACT_W, T1_W), f32)
    WT2 = jnp.zeros((T1_W, T2_W), f32)
    st1 = jnp.zeros((T1_W,), f32)
    st2 = jnp.zeros((T2_W,), f32)
    nets = [params["chords"]] + list(params["melody"])
    for n, tp in enumerate(nets):
        s1, b1 = _fold_bn(tp["conv1"]["b"], tp["bn1"])
        s2, b2 = _fold_bn(tp["conv2"]["b"], tp["bn2"])
        for r in range(NB):
            w1 = tp["conv1"]["W"][:, :, r, 0] * s1[None, :]           # (Z, HID)
            WT1 = WT1.at[r * ZIN_W + n * Z:r * ZIN_W + (n + 1) * Z,
                         n * HID:(n + 1) * HID].set(w1)
        WT2 = WT2.at[n * HID:(n + 1) * HID, n * Z:(n + 1) * Z].set(
            tp["conv2"]["W"][:, :, 0, 0] * s2[None, :])
        st1 = st1.at[n * HID:(n + 1) * HID].set(b1)
        st2 = st2.at[n * Z:(n + 1) * Z].set(b2)

    # ---- bar generators, block-structured over (track, s0, tap, w)
    A = [jnp.zeros((T2_W, LIN_W), f32) for _ in range(S0)]
    Bm = [jnp.zeros((ACT_W, LIN_W), f32) for _ in range(S0)]
    shl = [jnp.zeros((LIN_W,), f32) for _ in range(S0)]
    W1T = [jnp.zeros((C1_W, C1_W), f32) for _ in range(2)]
    W2T = [jnp.zeros((C1_W, C2_W), f32) for _ in range(2)]
    W3T = [jnp.zeros((C2_W, C2_W), f32) for _ in range(2)]
    WC4 = jnp.zeros((C2_W, C4_W), f32)
    WC5 = jnp.zeros((C4_W, C5_W), f32)
    shc1 = jnp.zeros((C1_W,), f32)
    shc2 = jnp.zeros((C2_W,), f32)
    shc3 = jnp.zeros((C2_W,), f32)
    shc4 = jnp.zeros((C4_W,), f32)
    shc5 = jnp.zeros((C5_W,), f32)

    for t, bp in enumerate(params["bars"]):
        # Linear + BN0: column permutation (c, s0) and split into z-part rows
        sf, bf = _fold_bn(bp["lin"]["b"], bp["bn0"])
        Wl = bp["lin"]["W"] * sf[None, :]                              # (4Z, HF)
        cols = slice(t * BH, (t + 1) * BH)
        for s in range(S0):
            idx = jnp.arange(BH) * S0 + s                              # feature = c*S0 + s
            Ws = Wl[:, idx]                                            # (4Z, BH)
            A[s] = A[s].at[0:Z, cols].set(Ws[0:Z])                     # chords (shared)
            A[s] = A[s].at[(1 + t) * Z:(2 + t) * Z, cols].set(Ws[2 * Z:3 * Z])   # melody_t
            Bm[s] = Bm[s].at[ACT_SG0:ACT_SG0 + Z, cols].set(Ws[Z:2 * Z])         # style
            Bm[s] = Bm[s].at[ACT_SG0 + (1 + t) * Z:ACT_SG0 + (2 + t) * Z,
                             cols].set(Ws[3 * Z:4 * Z])                          # groove_t
            shl[s] = shl[s].at[cols].set(bf[idx])

        # ConvTranspose (2,1) x3 -> per-tap, block-diagonal over track
        s1b, b1b = _fold_bn(bp["conv1"]["b"], bp["bn1"])
        s2b, b2b = _fold_bn(bp["conv2"]["b"], bp["bn2"])
        s3b, b3b = _fold_bn(bp["conv3"]["b"], bp["bn3"])
        for k in range(2):
            W1T[k] = W1T[k].at[t * BH:(t + 1) * BH, t * BH:(t + 1) * BH].set(
                bp["conv1"]["W"][:, :, k, 0] * s1b[None, :])
            W2T[k] = W2T[k].at[t * BH:(t + 1) * BH, t * C2C:(t + 1) * C2C].set(
                bp["conv2"]["W"][:, :, k, 0] * s2b[None, :])
            W3T[k] = W3T[k].at[t * C2C:(t + 1) * C2C, t * C2C:(t + 1) * C2C].set(
                bp["conv3"]["W"][:, :, k, 0] * s3b[None, :])
        shc1 = shc1.at[t * BH:(t + 1) * BH].set(b1b)
        shc2 = shc2.at[t * C2C:(t + 1) * C2C].set(b2b)
        shc3 = shc3.at[t * C2C:(t + 1) * C2C].set(b3b)

        # ConvTranspose (1,7): columns (w, cout), block-diagonal over track
        s4b, b4b = _fold_bn(bp["conv4"]["b"], bp["bn4"])
        w4 = jnp.transpose(bp["conv4"]["W"][:, :, 0, :] * s4b[None, :, None],
                           (0, 2, 1)).reshape(C2C, KW4 * C2C)
        WC4 = WC4.at[t * C2C:(t + 1) * C2C,
                     t * KW4 * C2C:(t + 1) * KW4 * C2C].set(w4)
        shc4 = shc4.at[t * KW4 * C2C:(t + 1) * KW4 * C2C].set(jnp.tile(b4b, KW4))

        # ConvTranspose (1,12): block-diag over (track, w); pitches padded to 128
        w5 = bp["conv5"]["W"][:, 0, 0, :]                              # (C2C, 12)
        for w in range(KW4):
            WC5 = WC5.at[t * KW4 * C2C + w * C2C:t * KW4 * C2C + (w + 1) * C2C,
                         t * PPAD + w * KW5:t * PPAD + (w + 1) * KW5].set(w5)
        shc5 = shc5.at[t * PPAD:t * PPAD + NP].set(bp["conv5"]["b"][0])

    def padrow(v):
        return jnp.zeros((C5_W,), f32).at[:v.shape[0]].set(v)

    shift_rows = [st1, st2, shl[0], shl[1], shc1, shc2, shc3, shc4, shc5]
    SH = jnp.stack([padrow(v) for v in shift_rows]
                   + [jnp.zeros((C5_W,), f32)] * (16 - len(shift_rows)))

    w512 = jnp.concatenate(
        [WC5, jnp.pad(WC4, ((0, 0), (0, C5_W - C4_W))), SH], axis=0)          # (272, 512)
    w160 = jnp.concatenate(
        [WT1, jnp.pad(WT2, ((0, 0), (0, T1_W - T2_W)))], axis=0)              # (416, 160)
    w64 = jnp.concatenate([A[0], A[1], Bm[0], Bm[1], W1T[0], W1T[1]], axis=0)  # (800, 64)
    w32 = jnp.concatenate([W2T[0], W2T[1], W3T[0], W3T[1]], axis=0)           # (192, 32)
    return w512, w160, w64, w32


# ------------------------------ forward pass --------------------------------
def muse_generator(params, chords, style, melody, groove):
    B = chords.shape[0]
    NRB = NB * B
    NR = S0 * NRB

    w512, w160, w64, w32 = _pack_weights(params)

    chords = chords.astype(jnp.float32)
    style = style.astype(jnp.float32)
    melody = melody.astype(jnp.float32)
    groove = groove.astype(jnp.float32)

    # activation slab (NR, 256): rows (s0, bar, b); lanes
    # [bar-blocked (chords, mel0..3) z | style | groove | s0 masks | pad]
    zin = jnp.concatenate([chords] + [melody[:, t, :] for t in range(T)], axis=1)
    zin_bb = jnp.zeros((NB, B, ACT_ZIN), jnp.float32)
    for r in range(NB):
        zin_bb = zin_bb.at[r, :, r * ZIN_W:(r + 1) * ZIN_W].set(zin)
    zin_bb = zin_bb.reshape(NRB, ACT_ZIN)
    sg = jnp.concatenate([style, groove.reshape(B, T * Z)], axis=1)           # (B, 80)
    base = jnp.concatenate([zin_bb, jnp.tile(sg, (NB, 1))], axis=1)           # (NRB, 240)
    m0 = jnp.concatenate([jnp.ones((NRB, 1), jnp.float32),
                          jnp.zeros((NRB, 1), jnp.float32)], axis=0)          # (NR, 1)
    acts = jnp.concatenate(
        [jnp.tile(base, (S0, 1)), m0, 1.0 - m0,
         jnp.zeros((NR, ACT_W - ACT_M0 - 2), jnp.float32)], axis=1)           # (NR, 256)

    def full_spec(shape):
        nz = (0,) * len(shape)
        return pl.BlockSpec(tuple(shape), lambda i, _z=nz: _z)

    raw = pl.pallas_call(
        _muse_kernel,
        out_shape=jax.ShapeDtypeStruct((8 * NR, C5_W), jnp.float32),
        grid=(1,),
        in_specs=[full_spec(a.shape) for a in (acts, w512, w160, w64, w32)],
        out_specs=full_spec((8 * NR, C5_W)),
        compiler_params=pltpu.CompilerParams(dimension_semantics=("arbitrary",)),
    )(acts, w512, w160, w64, w32)

    # rows = (k3, k2, k1, s0, bar, b); step = 8*s0 + 4*k1 + 2*k2 + k3
    out = raw.reshape(2, 2, 2, S0, NB, B, T, PPAD)[..., :NP]
    out = out.transpose(5, 6, 4, 3, 2, 1, 0, 7)
    return out.reshape(B, T, NB, STEPS, NP)


# ------------------- pure-JAX reference (for verification) ------------------
def _ref_fused(x, w, scale, shift, relu):
    y = jnp.dot(x, w, precision=jax.lax.Precision.HIGHEST)
    y = y * scale[None, :] + shift[None, :]
    return jnp.maximum(y, 0.0) if relu else y


def _ref_convT(x, conv, bn, relu):
    Bq, Cin, Hin, Win = x.shape
    _, Cout, kH, kW = conv["W"].shape
    x2 = x.transpose(0, 2, 3, 1).reshape(Bq * Hin * Win, Cin)
    w2 = conv["W"].reshape(Cin, Cout * kH * kW)
    s_c, t_c = _fold_bn(conv["b"], bn)
    y = _ref_fused(x2, w2, jnp.repeat(s_c, kH * kW), jnp.repeat(t_c, kH * kW), relu)
    y = y.reshape(Bq, Hin, Win, Cout, kH, kW)
    return y.transpose(0, 3, 1, 4, 2, 5).reshape(Bq, Cout, Hin * kH, Win * kW)


def _ref_temporal(z, p):
    x = z[:, :, None, None]
    h = _ref_convT(x, p["conv1"], p["bn1"], True)
    h = _ref_convT(h, p["conv2"], p["bn2"], True)
    return h[:, :, :, 0]


def _ref_bar(z, p):
    Bq = z.shape[0]
    s, t = _fold_bn(p["lin"]["b"], p["bn0"])
    h = _ref_fused(z, p["lin"]["W"], s, t, True)
    h = h.reshape(Bq, BH, S0, 1)
    h = _ref_convT(h, p["conv1"], p["bn1"], True)
    h = _ref_convT(h, p["conv2"], p["bn2"], True)
    h = _ref_convT(h, p["conv3"], p["bn3"], True)
    h = _ref_convT(h, p["conv4"], p["bn4"], True)
    h = _ref_convT(h, p["conv5"], None, False)
    return h.reshape(Bq, 1, 1, STEPS, NP)


def reference_forward(params, chords, style, melody, groove):
    chord_outs = _ref_temporal(chords, params["chords"])
    bar_outs = []
    for bar in range(NB):
        track_outs = []
        for track in range(T):
            mel = _ref_temporal(melody[:, track, :], params["melody"][track])[:, :, bar]
            z = jnp.concatenate(
                [chord_outs[:, :, bar], style, mel, groove[:, track, :]], axis=1)
            track_outs.append(_ref_bar(z, params["bars"][track]))
        bar_outs.append(jnp.concatenate(track_outs, axis=1))
    return jnp.concatenate(bar_outs, axis=2)


# ----------------------------------- main -----------------------------------
if __name__ == "__main__":
    key = jax.random.PRNGKey(0)
    kp, k1, k2, k3, k4 = jax.random.split(key, 5)
    params = init_params(kp)

    B = 2
    chords = jax.random.normal(k1, (B, Z), jnp.float32)
    style = jax.random.normal(k2, (B, Z), jnp.float32)
    melody = jax.random.normal(k3, (B, T, Z), jnp.float32)
    groove = jax.random.normal(k4, (B, T, Z), jnp.float32)

    out = jax.block_until_ready(
        jax.jit(muse_generator)(params, chords, style, melody, groove))
    assert out.shape == (B, T, NB, STEPS, NP), out.shape
    assert bool(jnp.all(jnp.isfinite(out)))

    ref = jax.block_until_ready(
        jax.jit(reference_forward)(params, chords, style, melody, groove))
    max_err = float(jnp.max(jnp.abs(out - ref)))
    assert bool(jnp.allclose(out, ref, rtol=3e-3, atol=3e-3)), max_err

    print("KERNEL_OK")
</pallas_src>

<mosaic_0001>
module attributes {stable_mosaic.version = 11 : i64} {
  func.func @_muse_kernel(%arg0: i32, %arg1: memref<8x256xf32, #tpu.memory_space<vmem>>, %arg2: memref<272x512xf32, #tpu.memory_space<vmem>>, %arg3: memref<416x160xf32, #tpu.memory_space<vmem>>, %arg4: memref<800x64xf32, #tpu.memory_space<vmem>>, %arg5: memref<192x32xf32, #tpu.memory_space<vmem>>, %arg6: memref<64x512xf32, #tpu.memory_space<vmem>>) attributes {dimension_semantics = [#tpu.dimension_semantics<arbitrary>], iteration_bounds = array<i64: 1>, scalar_prefetch = 0 : i64, scratch_operands = 0 : i64, tpu.core_type = #tpu.core_type<tc>, window_params = [{pipeline_mode = #tpu.pipeline_mode<synchronous>, transform_indices = @transform_0, window_bounds = array<i64: 8, 256>}, {pipeline_mode = #tpu.pipeline_mode<synchronous>, transform_indices = @transform_1, window_bounds = array<i64: 272, 512>}, {pipeline_mode = #tpu.pipeline_mode<synchronous>, transform_indices = @transform_2, window_bounds = array<i64: 416, 160>}, {pipeline_mode = #tpu.pipeline_mode<synchronous>, transform_indices = @transform_3, window_bounds = array<i64: 800, 64>}, {pipeline_mode = #tpu.pipeline_mode<synchronous>, transform_indices = @transform_4, window_bounds = array<i64: 192, 32>}, {pipeline_mode = #tpu.pipeline_mode<synchronous>, transform_indices = @transform_5, window_bounds = array<i64: 64, 512>}]} {
    %c0 = arith.constant 0 : index
    %c0_0 = arith.constant 0 : index
    %0 = vector.load %arg1[%c0, %c0_0] : memref<8x256xf32, #tpu.memory_space<vmem>>, vector<8x256xf32>
    %c0_1 = arith.constant 0 : index
    %c0_2 = arith.constant 0 : index
    %1 = vector.load %arg3[%c0_1, %c0_2] : memref<416x160xf32, #tpu.memory_space<vmem>>, vector<256x160xf32>
    %cst = arith.constant dense<0.000000e+00> : vector<8x160xf32>
    %2 = tpu.matmul %0, %1, %cst {dimension_numbers = #tpu.dot_dimension_numbers<[1], [0], [0], [1], [0, 0, 1, 1], [], []>} : vector<8x256xf32>, vector<256x160xf32>, vector<8x160xf32> -> vector<8x160xf32>
    %c256 = arith.constant 256 : index
    %c0_3 = arith.constant 0 : index
    %3 = vector.load %arg2[%c256, %c0_3] : memref<272x512xf32, #tpu.memory_space<vmem>>, vector<1x160xf32>
    %4 = vector.broadcast %3 : vector<1x160xf32> to vector<8x160xf32>
    %5 = arith.addf %2, %4 : vector<8x160xf32>
    %cst_4 = arith.constant 0.000000e+00 : f32
    %6 = vector.broadcast %cst_4 : f32 to vector<8x160xf32>
    %7 = arith.maximumf %5, %6 : vector<8x160xf32>
    %c256_5 = arith.constant 256 : index
    %c0_6 = arith.constant 0 : index
    %8 = vector.load %arg3[%c256_5, %c0_6] : memref<416x160xf32, #tpu.memory_space<vmem>>, vector<160x80xf32>
    %cst_7 = arith.constant dense<0.000000e+00> : vector<8x80xf32>
    %9 = tpu.matmul %7, %8, %cst_7 {dimension_numbers = #tpu.dot_dimension_numbers<[1], [0], [0], [1], [0, 0, 1, 1], [], []>} : vector<8x160xf32>, vector<160x80xf32>, vector<8x80xf32> -> vector<8x80xf32>
    %c257 = arith.constant 257 : index
    %c0_8 = arith.constant 0 : index
    %10 = vector.load %arg2[%c257, %c0_8] : memref<272x512xf32, #tpu.memory_space<vmem>>, vector<1x80xf32>
    %11 = vector.broadcast %10 : vector<1x80xf32> to vector<8x80xf32>
    %12 = arith.addf %9, %11 : vector<8x80xf32>
    %cst_9 = arith.constant 0.000000e+00 : f32
    %13 = vector.broadcast %cst_9 : f32 to vector<8x80xf32>
    %14 = arith.maximumf %12, %13 : vector<8x80xf32>
    %15 = vector.extract_strided_slice %0 {offsets = [0, 240], sizes = [8, 1], strides = [1, 1]} : vector<8x256xf32> to vector<8x1xf32>
    %16 = vector.extract_strided_slice %0 {offsets = [0, 241], sizes = [8, 1], strides = [1, 1]} : vector<8x256xf32> to vector<8x1xf32>
    %c0_10 = arith.constant 0 : index
    %c0_11 = arith.constant 0 : index
    %17 = vector.load %arg4[%c0_10, %c0_11] : memref<800x64xf32, #tpu.memory_space<vmem>>, vector<80x64xf32>
    %cst_12 = arith.constant dense<0.000000e+00> : vector<8x64xf32>
    %18 = tpu.matmul %14, %17, %cst_12 {dimension_numbers = #tpu.dot_dimension_numbers<[1], [0], [0], [1], [0, 0, 1, 1], [], []>} : vector<8x80xf32>, vector<80x64xf32>, vector<8x64xf32> -> vector<8x64xf32>
    %c160 = arith.constant 160 : index
    %c0_13 = arith.constant 0 : index
    %19 = vector.load %arg4[%c160, %c0_13] : memref<800x64xf32, #tpu.memory_space<vmem>>, vector<256x64xf32>
    %cst_14 = arith.constant dense<0.000000e+00> : vector<8x64xf32>
    %20 = tpu.matmul %0, %19, %cst_14 {dimension_numbers = #tpu.dot_dimension_numbers<[1], [0], [0], [1], [0, 0, 1, 1], [], []>} : vector<8x256xf32>, vector<256x64xf32>, vector<8x64xf32> -> vector<8x64xf32>
    %21 = arith.addf %18, %20 : vector<8x64xf32>
    %c258 = arith.constant 258 : index
    %c0_15 = arith.constant 0 : index
    %22 = vector.load %arg2[%c258, %c0_15] : memref<272x512xf32, #tpu.memory_space<vmem>>, vector<1x64xf32>
    %23 = vector.broadcast %22 : vector<1x64xf32> to vector<8x64xf32>
    %24 = arith.addf %21, %23 : vector<8x64xf32>
    %c80 = arith.constant 80 : index
    %c0_16 = arith.constant 0 : index
    %25 = vector.load %arg4[%c80, %c0_16] : memref<800x64xf32, #tpu.memory_space<vmem>>, vector<80x64xf32>
    %cst_17 = arith.constant dense<0.000000e+00> : vector<8x64xf32>
    %26 = tpu.matmul %14, %25, %cst_17 {dimension_numbers = #tpu.dot_dimension_numbers<[1], [0], [0], [1], [0, 0, 1, 1], [], []>} : vector<8x80xf32>, vector<80x64xf32>, vector<8x64xf32> -> vector<8x64xf32>
    %c416 = arith.constant 416 : index
    %c0_18 = arith.constant 0 : index
    %27 = vector.load %arg4[%c416, %c0_18] : memref<800x64xf32, #tpu.memory_space<vmem>>, vector<256x64xf32>
    %cst_19 = arith.constant dense<0.000000e+00> : vector<8x64xf32>
    %28 = tpu.matmul %0, %27, %cst_19 {dimension_numbers = #tpu.dot_dimension_numbers<[1], [0], [0], [1], [0, 0, 1, 1], [], []>} : vector<8x256xf32>, vector<256x64xf32>, vector<8x64xf32> -> vector<8x64xf32>
    %29 = arith.addf %26, %28 : vector<8x64xf32>
    %c259 = arith.constant 259 : index
    %c0_20 = arith.constant 0 : index
    %30 = vector.load %arg2[%c259, %c0_20] : memref<272x512xf32, #tpu.memory_space<vmem>>, vector<1x64xf32>
    %31 = vector.broadcast %30 : vector<1x64xf32> to vector<8x64xf32>
    %32 = arith.addf %29, %31 : vector<8x64xf32>
    %33 = vector.broadcast %15 : vector<8x1xf32> to vector<8x64xf32>
    %34 = arith.mulf %33, %24 : vector<8x64xf32>
    %35 = vector.broadcast %16 : vector<8x1xf32> to vector<8x64xf32>
    %36 = arith.mulf %35, %32 : vector<8x64xf32>
    %37 = arith.addf %34, %36 : vector<8x64xf32>
    %cst_21 = arith.constant 0.000000e+00 : f32
    %38 = vector.broadcast %cst_21 : f32 to vector<8x64xf32>
    %39 = arith.maximumf %37, %38 : vector<8x64xf32>
    %c672 = arith.constant 672 : index
    %c0_22 = arith.constant 0 : index
    %40 = vector.load %arg4[%c672, %c0_22] : memref<800x64xf32, #tpu.memory_space<vmem>>, vector<64x64xf32>
    %c736 = arith.constant 736 : index
    %c0_23 = arith.constant 0 : index
    %41 = vector.load %arg4[%c736, %c0_23] : memref<800x64xf32, #tpu.memory_space<vmem>>, vector<64x64xf32>
    %c260 = arith.constant 260 : index
    %c0_24 = arith.constant 0 : index
    %42 = vector.load %arg2[%c260, %c0_24] : memref<272x512xf32, #tpu.memory_space<vmem>>, vector<1x64xf32>
    %cst_25 = arith.constant dense<0.000000e+00> : vector<8x64xf32>
    %43 = tpu.matmul %39, %40, %cst_25 {dimension_numbers = #tpu.dot_dimension_numbers<[1], [0], [0], [1], [0, 0, 1, 1], [], []>} : vector<8x64xf32>, vector<64x64xf32>, vector<8x64xf32> -> vector<8x64xf32>
    %cst_26 = arith.constant dense<0.000000e+00> : vector<8x64xf32>
    %44 = tpu.matmul %39, %41, %cst_26 {dimension_numbers = #tpu.dot_dimension_numbers<[1], [0], [0], [1], [0, 0, 1, 1], [], []>} : vector<8x64xf32>, vector<64x64xf32>, vector<8x64xf32> -> vector<8x64xf32>
    %45 = tpu.concatenate %43, %44 in 0 : vector<8x64xf32>, vector<8x64xf32> -> vector<16x64xf32>
    %46 = vector.broadcast %42 : vector<1x64xf32> to vector<16x64xf32>
    %47 = arith.addf %45, %46 : vector<16x64xf32>
    %cst_27 = arith.constant 0.000000e+00 : f32
    %48 = vector.broadcast %cst_27 : f32 to vector<16x64xf32>
    %49 = arith.maximumf %47, %48 : vector<16x64xf32>
    %c0_28 = arith.constant 0 : index
    %c0_29 = arith.constant 0 : index
    %50 = vector.load %arg5[%c0_28, %c0_29] : memref<192x32xf32, #tpu.memory_space<vmem>>, vector<64x32xf32>
    %c64 = arith.constant 64 : index
    %c0_30 = arith.constant 0 : index
    %51 = vector.load %arg5[%c64, %c0_30] : memref<192x32xf32, #tpu.memory_space<vmem>>, vector<64x32xf32>
    %c261 = arith.constant 261 : index
    %c0_31 = arith.constant 0 : index
    %52 = vector.load %arg2[%c261, %c0_31] : memref<272x512xf32, #tpu.memory_space<vmem>>, vector<1x32xf32>
    %cst_32 = arith.constant dense<0.000000e+00> : vector<16x32xf32>
    %53 = tpu.matmul %49, %50, %cst_32 {dimension_numbers = #tpu.dot_dimension_numbers<[1], [0], [0], [1], [0, 0, 1, 1], [], []>} : vector<16x64xf32>, vector<64x32xf32>, vector<16x32xf32> -> vector<16x32xf32>
    %cst_33 = arith.constant dense<0.000000e+00> : vector<16x32xf32>
    %54 = tpu.matmul %49, %51, %cst_33 {dimension_numbers = #tpu.dot_dimension_numbers<[1], [0], [0], [1], [0, 0, 1, 1], [], []>} : vector<16x64xf32>, vector<64x32xf32>, vector<16x32xf32> -> vector<16x32xf32>
    %55 = tpu.concatenate %53, %54 in 0 : vector<16x32xf32>, vector<16x32xf32> -> vector<32x32xf32>
    %56 = vector.broadcast %52 : vector<1x32xf32> to vector<32x32xf32>
    %57 = arith.addf %55, %56 : vector<32x32xf32>
    %cst_34 = arith.constant 0.000000e+00 : f32
    %58 = vector.broadcast %cst_34 : f32 to vector<32x32xf32>
    %59 = arith.maximumf %57, %58 : vector<32x32xf32>
    %c128 = arith.constant 128 : index
    %c0_35 = arith.constant 0 : index
    %60 = vector.load %arg5[%c128, %c0_35] : memref<192x32xf32, #tpu.memory_space<vmem>>, vector<32x32xf32>
    %c160_36 = arith.constant 160 : index
    %c0_37 = arith.constant 0 : index
    %61 = vector.load %arg5[%c160_36, %c0_37] : memref<192x32xf32, #tpu.memory_space<vmem>>, vector<32x32xf32>
    %c262 = arith.constant 262 : index
    %c0_38 = arith.constant 0 : index
    %62 = vector.load %arg2[%c262, %c0_38] : memref<272x512xf32, #tpu.memory_space<vmem>>, vector<1x32xf32>
    %cst_39 = arith.constant dense<0.000000e+00> : vector<32x32xf32>
    %63 = tpu.matmul %59, %60, %cst_39 {dimension_numbers = #tpu.dot_dimension_numbers<[1], [0], [0], [1], [0, 0, 1, 1], [], []>} : vector<32x32xf32>, vector<32x32xf32>, vector<32x32xf32> -> vector<32x32xf32>
    %cst_40 = arith.constant dense<0.000000e+00> : vector<32x32xf32>
    %64 = tpu.matmul %59, %61, %cst_40 {dimension_numbers = #tpu.dot_dimension_numbers<[1], [0], [0], [1], [0, 0, 1, 1], [], []>} : vector<32x32xf32>, vector<32x32xf32>, vector<32x32xf32> -> vector<32x32xf32>
    %65 = tpu.concatenate %63, %64 in 0 : vector<32x32xf32>, vector<32x32xf32> -> vector<64x32xf32>
    %66 = vector.broadcast %62 : vector<1x32xf32> to vector<64x32xf32>
    %67 = arith.addf %65, %66 : vector<64x32xf32>
    %cst_41 = arith.constant 0.000000e+00 : f32
    %68 = vector.broadcast %cst_41 : f32 to vector<64x32xf32>
    %69 = arith.maximumf %67, %68 : vector<64x32xf32>
    %c224 = arith.constant 224 : index
    %c0_42 = arith.constant 0 : index
    %70 = vector.load %arg2[%c224, %c0_42] : memref<272x512xf32, #tpu.memory_space<vmem>>, vector<32x224xf32>
    %cst_43 = arith.constant dense<0.000000e+00> : vector<64x224xf32>
    %71 = tpu.matmul %69, %70, %cst_43 {dimension_numbers = #tpu.dot_dimension_numbers<[1], [0], [0], [1], [0, 0, 1, 1], [], []>} : vector<64x32xf32>, vector<32x224xf32>, vector<64x224xf32> -> vector<64x224xf32>
    %c263 = arith.constant 263 : index
    %c0_44 = arith.constant 0 : index
    %72 = vector.load %arg2[%c263, %c0_44] : memref<272x512xf32, #tpu.memory_space<vmem>>, vector<1x224xf32>
    %73 = vector.broadcast %72 : vector<1x224xf32> to vector<64x224xf32>
    %74 = arith.addf %71, %73 : vector<64x224xf32>
    %cst_45 = arith.constant 0.000000e+00 : f32
    %75 = vector.broadcast %cst_45 : f32 to vector<64x224xf32>
    %76 = arith.maximumf %74, %75 : vector<64x224xf32>
    %c0_46 = arith.constant 0 : index
    %c0_47 = arith.constant 0 : index
    %77 = vector.load %arg2[%c0_46, %c0_47] : memref<272x512xf32, #tpu.memory_space<vmem>>, vector<224x512xf32>
    %cst_48 = arith.constant dense<0.000000e+00> : vector<64x512xf32>
    %78 = tpu.matmul %76, %77, %cst_48 {dimension_numbers = #tpu.dot_dimension_numbers<[1], [0], [0], [1], [0, 0, 1, 1], [], []>} : vector<64x224xf32>, vector<224x512xf32>, vector<64x512xf32> -> vector<64x512xf32>
    %c264 = arith.constant 264 : index
    %c0_49 = arith.constant 0 : index
    %79 = vector.load %arg2[%c264, %c0_49] : memref<272x512xf32, #tpu.memory_space<vmem>>, vector<1x512xf32>
    %80 = vector.broadcast %79 : vector<1x512xf32> to vector<64x512xf32>
    %81 = arith.addf %78, %80 : vector<64x512xf32>
    %c0_50 = arith.constant 0 : index
    %c0_51 = arith.constant 0 : index
    %82 = vector.load %arg6[%c0_50, %c0_51] : memref<64x512xf32, #tpu.memory_space<vmem>>, vector<64x512xf32>
    tpu.vector_store %arg6[%c0_50, %c0_51], %81 {strides = array<i32>} : memref<64x512xf32, #tpu.memory_space<vmem>>, vector<64x512xf32>,
    return
  }
  func.func @transform_0(%arg0: i32) -> (i32, i32) {
    %c0_i32 = arith.constant 0 : i32
    %c0_i32_0 = arith.constant 0 : i32
    %c0_i32_1 = arith.constant 0 : i32
    return %c0_i32, %c0_i32_0 : i32, i32
  }
  func.func @transform_1(%arg0: i32) -> (i32, i32) {
    %c0_i32 = arith.constant 0 : i32
    %c0_i32_0 = arith.constant 0 : i32
    %c0_i32_1 = arith.constant 0 : i32
    return %c0_i32, %c0_i32_0 : i32, i32
  }
  func.func @transform_2(%arg0: i32) -> (i32, i32) {
    %c0_i32 = arith.constant 0 : i32
    %c0_i32_0 = arith.constant 0 : i32
    %c0_i32_1 = arith.constant 0 : i32
    return %c0_i32, %c0_i32_0 : i32, i32
  }
  func.func @transform_3(%arg0: i32) -> (i32, i32) {
    %c0_i32 = arith.constant 0 : i32
    %c0_i32_0 = arith.constant 0 : i32
    %c0_i32_1 = arith.constant 0 : i32
    return %c0_i32, %c0_i32_0 : i32, i32
  }
  func.func @transform_4(%arg0: i32) -> (i32, i32) {
    %c0_i32 = arith.constant 0 : i32
    %c0_i32_0 = arith.constant 0 : i32
    %c0_i32_1 = arith.constant 0 : i32
    return %c0_i32, %c0_i32_0 : i32, i32
  }
  func.func @transform_5(%arg0: i32) -> (i32, i32) {
    %c0_i32 = arith.constant 0 : i32
    %c0_i32_0 = arith.constant 0 : i32
    %c0_i32_1 = arith.constant 0 : i32
    return %c0_i32, %c0_i32_0 : i32, i32
  }
}

</mosaic_0001>

<bundles_post_ra>
// kernel: tile.33
= control target key start
LH: loop header
LB: loop body
LE: loop exit
PB: predicated region body
PF: predicated region fallthrough
CT: control target
= control target key end

     0   :  { %s22_s0 = inlined_call_operand.vmem [shape: f32[8], index: 0, kind: input, shape index: {}]   ;;  %s23_s1 = inlined_call_operand.vmem [shape: f32[7,8], index: 1, kind: output, shape index: {}]  }
   0x1   :  { %v4_v0 = vld [vmem:[%s22_s0] ss:$0 sm:$0xff] }
   0x2   :  { %5 = vst [vmem:[%s23_s1] sm:$0xff] %v4_v0 }

// kernel: tile.59
= control target key start
LH: loop header
LB: loop body
LE: loop exit
PB: predicated region body
PF: predicated region fallthrough
CT: control target
= control target key end

     0   :  { %vm22_vm0 = vcmask 916480   ;;  %s78_s0 = inlined_call_operand.vmem [shape: f32[2,4,240], index: 0, kind: input, shape index: {}]   ;;  %s79_s1 = inlined_call_operand.vmem [shape: f32[8,240], index: 1, kind: output, shape index: {}]  }
   0x1   :  { %v38_v0 = vld [vmem:[%s78_s0 + $0xc] sm:$0xf]  ;;  %v39_v1 = vld [vmem:[%s78_s0 + $0x8] sm:$0xf]  ;;  %v40_v2 = vld [vmem:[%s78_s0 + $0x4] sm:$0xf] }
   0x2   :  { %8 = vst [vmem:[#allocation0 + $0x18] sm:$0xf] %v38_v0  ;;  %13 = vst [vmem:[#allocation0 + $0x10] sm:$0xf] %v39_v1  ;;  %v18_v3 = vld [vmem:[%s78_s0] sm:$0xf] }
   0x3   :  { %17 = vst [vmem:[#allocation0 + $0x8] sm:$0xf] %v40_v2  ;;  %19 = vst [vmem:[#allocation0] sm:$0xf] %v18_v3 }
   0x9   :  { %v26_v5 = vld [vmem:[#allocation0 + $0x18] sm:$0xf]   ;;  %v33_v6 = vld [vmem:[#allocation0 + $0x10] sm:$0xf]  }
   0xa   :  { %v21_v4 = vld [vmem:[#allocation0 + $0x8] sm:$0xf]   ;;  %42 = vst.msk [vmem:[%s79_s1 + $0xc] sm:$0xf] %vm22_vm0, %v26_v5   ;;  %v30_v7 = vld [vmem:[#allocation0] sm:$0xf]  }
   0xb   :  { %41 = vst.msk [vmem:[%s79_s1 + $0x8] sm:$0xf] %vm22_vm0, %v21_v4   ;;  %43 = vst [vmem:[%s79_s1 + $0x4] sm:$0xf] %v33_v6  }
   0xc   :  { %31 = vst [vmem:[%s79_s1] sm:$0xf] %v30_v7  }

// kernel: muse_generator.1
= control target key start
LH: loop header
LB: loop body
LE: loop exit
PB: predicated region body
PF: predicated region fallthrough
CT: control target
= control target key end

     0   :  { %v2529_v3 = vmov 0.0|0.0   ;;  %vm193_vm0 = vcmask 261120   ;;  %vm2530_vm1 = vmmov 0   ;;  %vm380_vm2 = vcmask 654336   ;;  %s3863_s2 = inlined_call_operand.vmem [shape: f32[416,160], index: 2, kind: input, shape index: {}]   ;;  %s3864_s0 = inlined_call_operand.vmem [shape: f32[8,256], index: 0, kind: input, shape index: {}]   ;;  %s3865_s3 = inlined_call_operand.vmem [shape: f32[800,64], index: 3, kind: input, shape index: {}]   ;;  %s3866_s1 = inlined_call_operand.vmem [shape: f32[272,512], index: 1, kind: input, shape index: {}]   ;;  %s3867_s4 = inlined_call_operand.vmem [shape: f32[192,32], index: 4, kind: input, shape index: {}]   ;;  %s3868_s5 = inlined_call_operand.vmem [shape: f32[64,512], index: 5, kind: output, shape index: {}]  }
   0x1   :  { %v23_v0 = vld [vmem:[%s3863_s2 + $0x8] sm:$0xff]  ;;  %v25_v1 = vld [vmem:[%s3863_s2 + $0x18] sm:$0xff]  ;;  %v22_v2 = vld [vmem:[%s3863_s2] sm:$0xff]  ;;  %2206 = vmatprep.subr.bf16.mxu1 %v2529_v3  ;;  %vm670_vm3 = vcmask 523264   ;;  %vm1515_vm4 = vcmask 785408  }
   0x2   :  { %v2142_v4 = vpack.c.bf16 %v25_v1, %v23_v0  ;;  %v24_v5 = vld [vmem:[%s3863_s2 + $0x10] sm:$0xff]  ;;  %v27_v6 = vld [vmem:[%s3863_s2 + $0x28] sm:$0xff]  ;;  %v29_v7 = vld [vmem:[%s3863_s2 + $0x38] sm:$0xff] }
   0x3   :  { %v2144_v8 = vpack.c.bf16 %v24_v5, %v22_v2  ;;  %v2146_v9 = vpack.c.bf16 %v29_v7, %v27_v6  ;;  %v26_v10 = vld [vmem:[%s3863_s2 + $0x20] sm:$0xff]  ;;  %v28_v11 = vld [vmem:[%s3863_s2 + $0x30] sm:$0xff]  ;;  %v31_v12 = vld [vmem:[%s3863_s2 + $0x48] sm:$0xff] }
   0x4   :  { %2143 = vmatprep.subr.bf16.mxu0 %v2142_v4  ;;  %v33_v13 = vld [vmem:[%s3863_s2 + $0x58] sm:$0xff]  ;;  %v2148_v14 = vpack.c.bf16 %v28_v11, %v26_v10  ;;  %v30_v16 = vld [vmem:[%s3863_s2 + $0x40] sm:$0xff]  ;;  %v32_v17 = vld [vmem:[%s3863_s2 + $0x50] sm:$0xff] }
   0x5   :  { %2145 = vmatpush1.bf16.msra.mxu0 %v2144_v8  ;;  %v2150_v15 = vpack.c.bf16 %v33_v13, %v31_v12  ;;  %v35_v18 = vld [vmem:[%s3863_s2 + $0x68] sm:$0xff]  ;;  %v37_v19 = vld [vmem:[%s3863_s2 + $0x78] sm:$0xff]  ;;  %v2152_v20 = vpack.c.bf16 %v32_v17, %v30_v16  ;;  %v34_v22 = vld [vmem:[%s3863_s2 + $0x60] sm:$0xff] }
   0x6   :  { %2147 = vmatprep.subr.bf16.mxu0 %v2146_v9  ;;  %v2154_v21 = vpack.c.bf16 %v37_v19, %v35_v18  ;;  %v36_v23 = vld [vmem:[%s3863_s2 + $0x70] sm:$0xff]  ;;  %v39_v24 = vld [vmem:[%s3863_s2 + $0x88] sm:$0xff]  ;;  %v41_v25 = vld [vmem:[%s3863_s2 + $0x98] sm:$0xff] }
   0x7   :  { %v2156_v26 = vpack.c.bf16 %v36_v23, %v34_v22  ;;  %v2158_v27 = vpack.c.bf16 %v41_v25, %v39_v24  ;;  %v38_v28 = vld [vmem:[%s3863_s2 + $0x80] sm:$0xff]  ;;  %v40_v29 = vld [vmem:[%s3863_s2 + $0x90] sm:$0xff]  ;;  %v43_v30 = vld [vmem:[%s3863_s2 + $0xa8] sm:$0xff] }
   0x8   :  { %v45_v31 = vld [vmem:[%s3863_s2 + $0xb8] sm:$0xff]  ;;  %v2160_v32 = vpack.c.bf16 %v40_v29, %v38_v28  ;;  %v42_v34 = vld [vmem:[%s3863_s2 + $0xa0] sm:$0xff]  ;;  %v44_v35 = vld [vmem:[%s3863_s2 + $0xb0] sm:$0xff] }
   0x9   :  { %2149 = vmatpush1.bf16.msra.mxu0 %v2148_v14  ;;  %v2162_v33 = vpack.c.bf16 %v45_v31, %v43_v30  ;;  %v47_v36 = vld [vmem:[%s3863_s2 + $0xc8] sm:$0xff]  ;;  %v49_v37 = vld [vmem:[%s3863_s2 + $0xd8] sm:$0xff]  ;;  %v2164_v38 = vpack.c.bf16 %v44_v35, %v42_v34  ;;  %v46_v39 = vld [vmem:[%s3863_s2 + $0xc0] sm:$0xff] }
   0xa   :  { %2151 = vmatprep.subr.bf16.mxu0 %v2150_v15  ;;  %v48_v40 = vld [vmem:[%s3863_s2 + $0xd0] sm:$0xff]  ;;  %v2166_v41 = vpack.c.bf16 %v49_v37, %v47_v36  ;;  %v51_v42 = vld [vmem:[%s3863_s2 + $0xe8] sm:$0xff]  ;;  %v53_v43 = vld [vmem:[%s3863_s2 + $0xf8] sm:$0xff] }
   0xb   :  { %v2658_v44 = vld [vmem:[%s3864_s0 + $0x8] sm:$0xff]  ;;  %v172_v45 = vld [vmem:[%s3863_s2 + $0x200] sm:$0xff]  ;;  %v173_v46 = vld [vmem:[%s3863_s2 + $0x210] sm:$0xff]  ;;  %v2168_v50 = vpack.c.bf16 %v48_v40, %v46_v39  ;;  %v2170_v51 = vpack.c.bf16 %v53_v43, %v51_v42 }
   0xc   :  { %163 = vmatprep.mubr.f32.mxu0 %v2658_v44  ;;  %v174_v47 = vld [vmem:[%s3863_s2 + $0x220] sm:$0xff]  ;;  %v2207_v48 = vpack.c.bf16 %v173_v46, %v172_v45  ;;  %v175_v49 = vld [vmem:[%s3863_s2 + $0x230] sm:$0xff]  ;;  %v55_v54 = vld [vmem:[%s3863_s2 + $0x108] sm:$0xff] }
   0xd   :  { %2153 = vmatpush1.bf16.msra.mxu0 %v2152_v20  ;;  %v50_v52 = vld [vmem:[%s3863_s2 + $0xe0] sm:$0xff]  ;;  %v52_v53 = vld [vmem:[%s3863_s2 + $0xf0] sm:$0xff]  ;;  %v2210_v55 = vpack.c.bf16 %v175_v49, %v174_v47  ;;  %v57_v56 = vld [vmem:[%s3863_s2 + $0x118] sm:$0xff] }
   0xe   :  { %2155 = vmatprep.subr.bf16.mxu0 %v2154_v21  ;;  %2208 = vmatpush1.bf16.msra.mxu1 %v2207_v48  ;;  %v176_v57 = vld [vmem:[%s3863_s2 + $0x240] sm:$0xff]  ;;  %v177_v58 = vld [vmem:[%s3863_s2 + $0x250] sm:$0xff]  ;;  %v2172_v59 = vpack.c.bf16 %v52_v53, %v50_v52  ;;  %v2174_v60 = vpack.c.bf16 %v57_v56, %v55_v54  ;;  %v59_v63 = vld [vmem:[%s3863_s2 + $0x128] sm:$0xff] }
   0xf   :  { %2209 = vmatprep.subr.bf16.mxu1 %v2529_v3  ;;  %v54_v61 = vld [vmem:[%s3863_s2 + $0x100] sm:$0xff]  ;;  %v56_v62 = vld [vmem:[%s3863_s2 + $0x110] sm:$0xff]  ;;  %v2213_v0 = vpack.c.bf16 %v177_v58, %v176_v57  ;;  %v61_v1 = vld [vmem:[%s3863_s2 + $0x138] sm:$0xff] }
  0x10   :  { %v178_v2 = vld [vmem:[%s3863_s2 + $0x260] sm:$0xff]  ;;  %v179_v4 = vld [vmem:[%s3863_s2 + $0x270] sm:$0xff]  ;;  %v2176_v5 = vpack.c.bf16 %v56_v62, %v54_v61  ;;  %v2178_v6 = vpack.c.bf16 %v61_v1, %v59_v63  ;;  %v63_v9 = vld [vmem:[%s3863_s2 + $0x148] sm:$0xff] }
  0x11   :  { %2157 = vmatpush1.bf16.msra.mxu0 %v2156_v26  ;;  %v58_v7 = vld [vmem:[%s3863_s2 + $0x120] sm:$0xff]  ;;  %v60_v8 = vld [vmem:[%s3863_s2 + $0x130] sm:$0xff]  ;;  %v2216_v10 = vpack.c.bf16 %v179_v4, %v178_v2  ;;  %v65_v11 = vld [vmem:[%s3863_s2 + $0x158] sm:$0xff] }
  0x12   :  { %2159 = vmatprep.subr.bf16.mxu0 %v2158_v27  ;;  %2211 = vmatpush1.bf16.msra.mxu1 %v2210_v55  ;;  %v180_v12 = vld [vmem:[%s3863_s2 + $0x280] sm:$0xff]  ;;  %v181_v13 = vld [vmem:[%s3863_s2 + $0x290] sm:$0xff]  ;;  %v2180_v14 = vpack.c.bf16 %v60_v8, %v58_v7  ;;  %v2182_v15 = vpack.c.bf16 %v65_v11, %v63_v9  ;;  %v67_v18 = vld [vmem:[%s3863_s2 + $0x168] sm:$0xff] }
  0x13   :  { %2212 = vmatprep.subr.bf16.mxu1 %v2529_v3  ;;  %v62_v16 = vld [vmem:[%s3863_s2 + $0x140] sm:$0xff]  ;;  %v64_v17 = vld [vmem:[%s3863_s2 + $0x150] sm:$0xff]  ;;  %v2219_v19 = vpack.c.bf16 %v181_v13, %v180_v12  ;;  %v69_v20 = vld [vmem:[%s3863_s2 + $0x178] sm:$0xff] }
  0x14   :  { %v182_v21 = vld [vmem:[%s3863_s2 + $0x2a0] sm:$0xff]  ;;  %v183_v22 = vld [vmem:[%s3863_s2 + $0x2b0] sm:$0xff]  ;;  %v2184_v23 = vpack.c.bf16 %v64_v17, %v62_v16  ;;  %v2186_v24 = vpack.c.bf16 %v69_v20, %v67_v18  ;;  %v71_v27 = vld [vmem:[%s3863_s2 + $0x188] sm:$0xff] }
  0x15   :  { %2161 = vmatpush1.bf16.msra.mxu0 %v2160_v32  ;;  %v66_v25 = vld [vmem:[%s3863_s2 + $0x160] sm:$0xff]  ;;  %v68_v26 = vld [vmem:[%s3863_s2 + $0x170] sm:$0xff]  ;;  %v2222_v28 = vpack.c.bf16 %v183_v22, %v182_v21  ;;  %v73_v29 = vld [vmem:[%s3863_s2 + $0x198] sm:$0xff] }
  0x16   :  { %2163 = vmatprep.subr.bf16.mxu0 %v2162_v33  ;;  %2214 = vmatpush1.bf16.msra.mxu1 %v2213_v0  ;;  %v184_v30 = vld [vmem:[%s3863_s2 + $0x2c0] sm:$0xff]  ;;  %v185_v31 = vld [vmem:[%s3863_s2 + $0x2d0] sm:$0xff]  ;;  %v2188_v32 = vpack.c.bf16 %v68_v26, %v66_v25  ;;  %v2190_v33 = vpack.c.bf16 %v73_v29, %v71_v27  ;;  %v75_v36 = vld [vmem:[%s3863_s2 + $0x1a8] sm:$0xff] }
  0x17   :  { %2215 = vmatprep.subr.bf16.mxu1 %v2529_v3  ;;  %v70_v34 = vld [vmem:[%s3863_s2 + $0x180] sm:$0xff]  ;;  %v72_v35 = vld [vmem:[%s3863_s2 + $0x190] sm:$0xff]  ;;  %v2225_v37 = vpack.c.bf16 %v185_v31, %v184_v30  ;;  %v79_v47 = vld [vmem:[%s3863_s2 + $0x1c8] sm:$0xff] }
  0x18   :  { %v186_v39 = vld [vmem:[%s3863_s2 + $0x2e0] sm:$0xff]  ;;  %v187_v40 = vld [vmem:[%s3863_s2 + $0x2f0] sm:$0xff]  ;;  %v81_v48 = vld [vmem:[%s3863_s2 + $0x1d8] sm:$0xff] }
  0x19   :  { %2165 = vmatpush1.bf16.msra.mxu0 %v2164_v38  ;;  %v77_v38 = vld [vmem:[%s3863_s2 + $0x1b8] sm:$0xff]  ;;  %v74_v43 = vld [vmem:[%s3863_s2 + $0x1a0] sm:$0xff]  ;;  %v76_v45 = vld [vmem:[%s3863_s2 + $0x1b0] sm:$0xff]  ;;  %v2228_v46 = vpack.c.bf16 %v187_v40, %v186_v39 }
  0x1a   :  { %2167 = vmatprep.subr.bf16.mxu0 %v2166_v41  ;;  %2217 = vmatpush1.bf16.msra.mxu1 %v2216_v10  ;;  %v2192_v41 = vpack.c.bf16 %v72_v35, %v70_v34  ;;  %v2194_v42 = vpack.c.bf16 %v77_v38, %v75_v36  ;;  %v2196_v49 = vpack.c.bf16 %v76_v45, %v74_v43  ;;  %v80_v52 = vld [vmem:[%s3863_s2 + $0x1d0] sm:$0xff]  ;;  %v83_v53 = vld [vmem:[%s3863_s2 + $0x1e8] sm:$0xff]  ;;  %v85_v54 = vld [vmem:[%s3863_s2 + $0x1f8] sm:$0xff] }
  0x1b   :  { %2218 = vmatprep.subr.bf16.mxu1 %v2529_v3  ;;  %v2202_v56 = vpack.c.bf16 %v85_v54, %v83_v53  ;;  %v82_v57 = vld [vmem:[%s3863_s2 + $0x1e0] sm:$0xff]  ;;  %v84_v58 = vld [vmem:[%s3863_s2 + $0x1f0] sm:$0xff]  ;;  %v269_v8 = vld [vmem:[%s3865_s3 + $0x8] sm:$0xff] }
  0x1c   :  { %v188_v61 = vld [vmem:[%s3863_s2 + $0x300] sm:$0xff]  ;;  %v189_v62 = vld [vmem:[%s3863_s2 + $0x310] sm:$0xff]  ;;  %v271_v11 = vld [vmem:[%s3865_s3 + $0x18] sm:$0xff] }
  0x1d   :  { %2169 = vmatpush1.bf16.msra.mxu0 %v2168_v50  ;;  %v2198_v50 = vpack.c.bf16 %v81_v48, %v79_v47  ;;  %v2231_v63 = vpack.c.bf16 %v189_v62, %v188_v61  ;;  %v190_v0 = vld [vmem:[%s3863_s2 + $0x320] sm:$0xff]  ;;  %v191_v1 = vld [vmem:[%s3863_s2 + $0x330] sm:$0xff]  ;;  %v275_v17 = vld [vmem:[%s3865_s3 + $0x38] sm:$0xff] }
  0x1e   :  { %2171 = vmatprep.subr.bf16.mxu0 %v2170_v51  ;;  %2220 = vmatpush1.bf16.msra.mxu1 %v2219_v19  ;;  %v78_v51 = vld [vmem:[%s3863_s2 + $0x1c0] sm:$0xff]  ;;  %v2234_v2 = vpack.c.bf16 %v191_v1, %v190_v0  ;;  %v270_v10 = vld [vmem:[%s3865_s3 + $0x10] sm:$0xff]  ;;  %v89_v19 = vlaneseq  ;;  %v279_v30 = vld [vmem:[%s3865_s3 + $0xa8] sm:$0xff] }
  0x1f   :  { %2221 = vmatprep.subr.bf16.mxu1 %v2529_v3  ;;  %v2200_v55 = vpack.c.bf16 %v80_v52, %v78_v51  ;;  %v294_v4 = vld [vmem:[%s3865_s3 + $0x120] sm:$0xff]  ;;  %v2272_v12 = vpack.c.bf16 %v271_v11, %v270_v10  ;;  %v274_v16 = vld [vmem:[%s3865_s3 + $0x30] sm:$0xff]  ;;  %v281_v39 = vld [vmem:[%s3865_s3 + $0xb8] sm:$0xff] }
  0x20   :  { %v268_v7 = vld [vmem:[%s3865_s3] sm:$0xff]  ;;  %v2278_v18 = vpack.c.bf16 %v275_v17, %v274_v16  ;;  %v2873_v20 = vshrl.u32 %v89_v19, 7  ;;  %v280_v38 = vld [vmem:[%s3865_s3 + $0xb0] sm:$0xff]  ;;  %v301_v48 = vld [vmem:[%s3865_s3 + $0x158] sm:$0xff] }
  0x21   :  { %2173 = vmatpush1.bf16.msra.mxu0 %v2172_v59  ;;  %v2204_v59 = vpack.c.bf16 %v84_v58, %v82_v57  ;;  %v2269_v9 = vpack.c.bf16 %v269_v8, %v268_v7  ;;  %v272_v13 = vld [vmem:[%s3865_s3 + $0x20] sm:$0xff]  ;;  %v300_v47 = vld [vmem:[%s3865_s3 + $0x150] sm:$0xff]  ;;  %v285_v52 = vld [vmem:[%s3865_s3 + $0xd8] sm:$0xff] }
  0x22   :  { %2175 = vmatprep.subr.bf16.mxu0 %v2174_v60  ;;  %2223 = vmatpush1.bf16.msra.mxu1 %v2222_v28  ;;  %v2822_v60 = vld [vmem:[%s3864_s0] sm:$0xff]  ;;  %v2876_v21 = vsub.s32 0, %v2873_v20  ;;  %v284_v51 = vld [vmem:[%s3865_s3 + $0xd0] sm:$0xff]  ;;  %v303_v54 = vld [vmem:[%s3865_s3 + $0x168] sm:$0xff] }
  0x23   :  { %2224 = vmatprep.subr.bf16.mxu1 %v2529_v3  ;;  %v1802_v22 = vld [vmem:[%s3866_s1 + $0x400] ss:$8 sm:$0x3]  ;;  %v305_v61 = vld [vmem:[%s3865_s3 + $0x178] sm:$0xff]  ;;  %v288_v0 = vld [vmem:[%s3865_s3 + $0xf0] sm:$0xff] }
  0x24   :  { %v278_v29 = vld [vmem:[%s3865_s3 + $0xa0] sm:$0xff]  ;;  %v287_v58 = vld [vmem:[%s3865_s3 + $0xe8] sm:$0xff]  ;;  %v289_v1 = vld [vmem:[%s3865_s3 + $0xf8] sm:$0xff] }
  0x25   :  { %2177 = vmatpush1.bf16.msra.mxu0 %v2176_v5  ;;  %v295_v5 = vld [vmem:[%s3865_s3 + $0x128] sm:$0xff]  ;;  %v2238_v35 = vpack.c.bf16 %v279_v30, %v278_v29  ;;  %v298_v40 = vld [vmem:[%s3865_s3 + $0x140] sm:$0xff]  ;;  %v309_v10 = vld [vmem:[%s3865_s3 + $0x198] sm:$0xff] }
  0x26   :  { %2179 = vmatprep.subr.bf16.mxu0 %v2178_v6  ;;  %2226 = vmatpush1.bf16.msra.mxu1 %v2225_v37  ;;  %v2236_v6 = vpack.c.bf16 %v295_v5, %v294_v4  ;;  %v282_v45 = vld [vmem:[%s3865_s3 + $0xc0] sm:$0xff]  ;;  %v307_v4 = vld [vmem:[%s3865_s3 + $0x188] sm:$0xff]  ;;  %v2258_v5 = vpack.c.bf16 %v289_v1, %v288_v0  ;;  %v469_v29 = vld [vmem:[%s3865_s3 + $0x1b8] sm:$0xff] }
  0x27   :  { %2227 = vmatprep.subr.bf16.mxu1 %v2529_v3  ;;  %v302_v53 = vld [vmem:[%s3865_s3 + $0x160] sm:$0xff]  ;;  %v291_v8 = vld [vmem:[%s3865_s3 + $0x108] sm:$0xff] }
  0x28   :  { %v286_v57 = vld [vmem:[%s3865_s3 + $0xe0] sm:$0xff]  ;;  %v483_v16 = vld [vmem:[%s3865_s3 + $0x228] sm:$0xff] }
  0x29   :  { %2181 = vmatpush1.bf16.msra.mxu0 %v2180_v14  ;;  %v273_v14 = vld [vmem:[%s3865_s3 + $0x28] sm:$0xff]  ;;  %v2254_v62 = vpack.c.bf16 %v287_v58, %v286_v57  ;;  %v290_v7 = vld [vmem:[%s3865_s3 + $0x100] sm:$0xff]  ;;  %v476_v57 = vld [vmem:[%s3865_s3 + $0x1f0] sm:$0xff] }
  0x2a   :  { %2183 = vmatprep.subr.bf16.mxu0 %v2182_v15  ;;  %2229 = vmatpush1.bf16.msra.mxu1 %v2228_v46  ;;  %v2275_v15 = vpack.c.bf16 %v273_v14, %v272_v13  ;;  %v283_v46 = vld [vmem:[%s3865_s3 + $0xc8] sm:$0xff]  ;;  %v2262_v11 = vpack.c.bf16 %v291_v8, %v290_v7  ;;  %v292_v13 = vld [vmem:[%s3865_s3 + $0x110] sm:$0xff]  ;;  %v293_v14 = vld [vmem:[%s3865_s3 + $0x118] sm:$0xff] }
  0x2b   :  { %2230 = vmatprep.subr.bf16.mxu1 %v2529_v3  ;;  %v2266_v17 = vpack.c.bf16 %v293_v14, %v292_v13  ;;  %v466_v19 = vld [vmem:[%s3865_s3 + $0x1a0] sm:$0xff]  ;;  %v477_v58 = vld [vmem:[%s3865_s3 + $0x1f8] sm:$0xff]  ;;  %v479_v1 = vld [vmem:[%s3865_s3 + $0x208] sm:$0xff] }
  0x2c   :  { %v486_v30 = vld [vmem:[%s3865_s3 + $0x240] sm:$0xff]  ;;  %v480_v7 = vld [vmem:[%s3865_s3 + $0x210] sm:$0xff]  ;;  %v481_v8 = vld [vmem:[%s3865_s3 + $0x218] sm:$0xff] }
  0x2d   :  { %2185 = vmatpush1.bf16.msra.mxu0 %v2184_v23  ;;  %v2882_v23 = vsub.s32 1, %v2873_v20  ;;  %v478_v0 = vld [vmem:[%s3865_s3 + $0x200] sm:$0xff]  ;;  %v456_v13 = vld [vmem:[%s3865_s3 + $0x50] sm:$0xff] }
  0x2e   :  { %2187 = vmatprep.subr.bf16.mxu0 %v2186_v24  ;;  %2232 = vmatpush1.bf16.msra.mxu1 %v2231_v63  ;;  %v92_v24 = vrot.slane %v1802_v22, %v2876_v21 }
  0x2f   :  { %2233 = vmatprep.subr.bf16.mxu1 %v2529_v3  ;;  %v96_v25 = vrot.slane %v1802_v22, %v2882_v23  ;;  %v467_v22 = vld [vmem:[%s3865_s3 + $0x1a8] sm:$0xff] }
  0x31   :  { %2189 = vmatpush1.bf16.msra.mxu0 %v2188_v32  ;;  %v296_v32 = vld [vmem:[%s3865_s3 + $0x130] sm:$0xff] }
  0x32   :  { %2191 = vmatprep.subr.bf16.mxu0 %v2190_v33  ;;  %2235 = vmatpush1.bf16.msra.mxu1 %v2234_v2  ;;  %v297_v33 = vld [vmem:[%s3865_s3 + $0x138] sm:$0xff]  ;;  %v306_v2 = vld [vmem:[%s3865_s3 + $0x180] sm:$0xff] }
  0x33   :  { %2237 = vmatprep.subr.bf16.mxu1 %v2236_v6  ;;  %v2240_v37 = vpack.c.bf16 %v297_v33, %v296_v32  ;;  %v2260_v6 = vpack.c.bf16 %v307_v4, %v306_v2  ;;  %v2309_v2 = vpack.c.bf16 %v479_v1, %v478_v0  ;;  %v496_v4 = vld [vmem:[%s3865_s3 + $0x290] sm:$0xff]  ;;  %v668_v0 = vld [vmem:[%s3865_s3 + $0x318] sm:$0xff] }
  0x35   :  { %2193 = vmatpush1.bf16.msra.mxu0 %v2192_v41  ;;  %v299_v41 = vld [vmem:[%s3865_s3 + $0x148] sm:$0xff] }
  0x36   :  { %2195 = vmatprep.subr.bf16.mxu0 %v2194_v42  ;;  %v2242_v42 = vpack.c.bf16 %v281_v39, %v280_v38  ;;  %v2244_v43 = vpack.c.bf16 %v299_v41, %v298_v40  ;;  %v489_v38 = vld [vmem:[%s3865_s3 + $0x258] sm:$0xff]  ;;  %v276_v40 = vld [vmem:[%s3865_s3 + $0x40] sm:$0xff]  ;;  %v277_v41 = vld [vmem:[%s3865_s3 + $0x48] sm:$0xff] }
  0x39   :  { %2197 = vmatpush1.bf16.msra.mxu0 %v2196_v49  ;;  %v2246_v49 = vpack.c.bf16 %v283_v46, %v282_v45  ;;  %v473_v45 = vld [vmem:[%s3865_s3 + $0x1d8] sm:$0xff] }
  0x3a   :  { %2199 = vmatprep.subr.bf16.mxu0 %v2198_v50  ;;  %v2248_v50 = vpack.c.bf16 %v301_v48, %v300_v47  ;;  %v490_v47 = vld [vmem:[%s3865_s3 + $0x260] sm:$0xff]  ;;  %v491_v48 = vld [vmem:[%s3865_s3 + $0x268] sm:$0xff] }
  0x3d   :  { %2201 = vmatpush1.bf16.msra.mxu0 %v2200_v55  ;;  %v2250_v55 = vpack.c.bf16 %v285_v52, %v284_v51  ;;  %v475_v51 = vld [vmem:[%s3865_s3 + $0x1e8] sm:$0xff] }
  0x3e   :  { %2203 = vmatprep.subr.bf16.mxu0 %v2202_v56  ;;  %v2252_v56 = vpack.c.bf16 %v303_v54, %v302_v53  ;;  %v2531_v53 = vmov 0.0   ;;  %v492_v54 = vld [vmem:[%s3865_s3 + $0x270] sm:$0xff] }
  0x41   :  { %2205 = vmatpush1.bf16.msra.mxu0 %v2204_v59  ;;  %v304_v59 = vld [vmem:[%s3865_s3 + $0x170] sm:$0xff] }
  0x42   :  { %2268 = vmatprep.subr.bf16.mxu0 %v2529_v3  ;;  %v2256_v63 = vpack.c.bf16 %v305_v61, %v304_v59  ;;  %v2305_v59 = vpack.c.bf16 %v477_v58, %v476_v57  ;;  %v494_v61 = vld [vmem:[%s3865_s3 + $0x280] sm:$0xff]  ;;  %v666_v57 = vld [vmem:[%s3865_s3 + $0x308] sm:$0xff] }
  0x44   :  { %164 = vmatmul.mubr.f32.vlgmr.msra.gmra.mrb[0].mxu0 %v2822_v60 }
  0x45   :  { %2270 = vmatpush3.bf16.msra.mxu0 %v2269_v9  ;;  %v308_v9 = vld [vmem:[%s3865_s3 + $0x190] sm:$0xff]  ;;  %2012 = vmatprep.mubr.msk.f32.mxu0 %vm2530_vm1, %v2531_v53 }
  0x46   :  { %2271 = vmatprep.subr.bf16.mxu0 %v2529_v3 }
  0x49   :  { %2273 = vmatpush3.bf16.msra.mxu0 %v2272_v12  ;;  %v2264_v12 = vpack.c.bf16 %v309_v10, %v308_v9  ;;  %v2313_v9 = vpack.c.bf16 %v481_v8, %v480_v7  ;;  %v2532_v10 = vmov 112  }
  0x4a   :  { %2274 = vmatprep.subr.bf16.mxu0 %v2529_v3  ;;  %2527 = vset.pattern.permute.xlu0 %v2532_v10 }
  0x4b   :  { %642 = vperm.xlu0 %2527, %v2658_v44  }
  0x4d   :  { %2276 = vmatpush3.bf16.msra.mxu0 %v2275_v15  ;;  %v482_v15 = vld [vmem:[%s3865_s3 + $0x220] sm:$0xff] }
  0x4e   :  { %2277 = vmatprep.subr.bf16.mxu0 %v2529_v3 }
  0x51   :  { %2279 = vmatpush3.bf16.msra.mxu0 %v2278_v18  ;;  %v2283_v18 = vpack.c.bf16 %v483_v16, %v482_v15 }
  0x52   :  { %2280 = vmatprep.subr.bf16.mxu0 %v2529_v3 }
 0x117   :  { %v165_v26 = vpop.f32.mrb[0].mxu0 }
 0x118   :  { %v166_v27 = vadd.f32 %v165_v26, %v92_v24  ;;  %v167_v28 = vpop.f32.mrb[1].mxu0  ;;  %v484_v24 = vld [vmem:[%s3865_s3 + $0x230] sm:$0xff]  ;;  %v2285_v26 = vpack.c.bf16 %v467_v22, %v466_v19  ;;  %v459_v19 = vld [vmem:[%s3865_s3 + $0x68] sm:$0xff] }
 0x119   :  { %v168_v31 = vadd.f32 %v167_v28, %v96_v25  ;;  %v485_v25 = vld [vmem:[%s3865_s3 + $0x238] sm:$0xff]  ;;  %v468_v28 = vld [vmem:[%s3865_s3 + $0x1b0] sm:$0xff] }
 0x11a   :  { %v170_v36 = vmax.f32 %v166_v27, 0.0  ;;  %v2287_v27 = vpack.c.bf16 %v485_v25, %v484_v24  ;;  %v2289_v32 = vpack.c.bf16 %v469_v29, %v468_v28  ;;  %v460_v24 = vld [vmem:[%s3865_s3 + $0x70] sm:$0xff]  ;;  %v461_v25 = vld [vmem:[%s3865_s3 + $0x78] sm:$0xff]  ;;  %v463_v28 = vld [vmem:[%s3865_s3 + $0x88] sm:$0xff] }
 0x11b   :  { %v171_v34 = vmax.f32 %v168_v31, 0.0  ;;  %v487_v31 = vld [vmem:[%s3865_s3 + $0x248] sm:$0xff] }
 0x11c   :  { %v2291_v33 = vpack.c.bf16 %v487_v31, %v486_v30  ;;  %v464_v30 = vld [vmem:[%s3865_s3 + $0x90] sm:$0xff]  ;;  %v465_v31 = vld [vmem:[%s3865_s3 + $0x98] sm:$0xff] }
 0x11d   :  { %1803 = vmatprep.mubr.msk.f32.mxu1 %vm193_vm0, %v171_v34  ;;  %v470_v34 = vld [vmem:[%s3865_s3 + $0x1c0] sm:$0xff] }
 0x11e   :  { %262 = vmatmul.mubr.f32.vlgmr.msra.gmra.mrb[0].mxu1 %v170_v36 }
 0x11f   :  { %2239 = vmatpush3.bf16.msra.mxu1 %v2238_v35  ;;  %374 = vmatprep.mubr.f32.mxu1 %v2658_v44  ;;  %v471_v35 = vld [vmem:[%s3865_s3 + $0x1c8] sm:$0xff] }
 0x120   :  { %2241 = vmatprep.subr.bf16.mxu1 %v2240_v37  ;;  %v2293_v36 = vpack.c.bf16 %v471_v35, %v470_v34  ;;  %v488_v37 = vld [vmem:[%s3865_s3 + $0x250] sm:$0xff] }
 0x121   :  { %v2295_v39 = vpack.c.bf16 %v489_v38, %v488_v37  ;;  %v654_v37 = vld [vmem:[%s3865_s3 + $0x2a8] sm:$0xff]  ;;  %v661_v38 = vld [vmem:[%s3865_s3 + $0x2e0] sm:$0xff] }
 0x123   :  { %2243 = vmatpush3.bf16.msra.mxu1 %v2242_v42  ;;  %v472_v42 = vld [vmem:[%s3865_s3 + $0x1d0] sm:$0xff] }
 0x124   :  { %2245 = vmatprep.subr.bf16.mxu1 %v2244_v43  ;;  %v2281_v43 = vpack.c.bf16 %v277_v41, %v276_v40  ;;  %v2297_v46 = vpack.c.bf16 %v473_v45, %v472_v42  ;;  %v662_v40 = vld [vmem:[%s3865_s3 + $0x2e8] sm:$0xff]  ;;  %v655_v45 = vld [vmem:[%s3865_s3 + $0x2b0] sm:$0xff] }
 0x125   :  { %v2343_v41 = vpack.c.bf16 %v662_v40, %v661_v38  ;;  %v825_v38 = vld [vmem:[%s3867_s4 + $0x38] sm:$0xff] }
 0x126   :  { %2282 = vmatpush3.bf16.msra.mxu0 %v2281_v43 }
 0x127   :  { %2247 = vmatpush3.bf16.msra.mxu1 %v2246_v49  ;;  %v2299_v49 = vpack.c.bf16 %v491_v48, %v490_v47  ;;  %2315 = vmatprep.subr.bf16.mxu0 %v2529_v3  ;;  %v663_v47 = vld [vmem:[%s3865_s3 + $0x2f0] sm:$0xff] }
 0x128   :  { %2249 = vmatprep.subr.bf16.mxu1 %v2248_v50  ;;  %v474_v50 = vld [vmem:[%s3865_s3 + $0x1e0] sm:$0xff] }
 0x129   :  { %v2301_v52 = vpack.c.bf16 %v475_v51, %v474_v50  ;;  %v664_v50 = vld [vmem:[%s3865_s3 + $0x2f8] sm:$0xff] }
 0x12a   :  { %v2346_v51 = vpack.c.bf16 %v664_v50, %v663_v47  ;;  %v669_v50 = vld [vmem:[%s3866_s1 + $0x404] ss:$0 sm:$0xff] }
 0x12b   :  { %2251 = vmatpush3.bf16.msra.mxu1 %v2250_v55  ;;  %v493_v55 = vld [vmem:[%s3865_s3 + $0x278] sm:$0xff] }
 0x12c   :  { %2253 = vmatprep.subr.bf16.mxu1 %v2252_v56  ;;  %v2303_v56 = vpack.c.bf16 %v493_v55, %v492_v54  ;;  %v658_v54 = vld [vmem:[%s3865_s3 + $0x2c8] sm:$0xff] }
 0x12f   :  { %2255 = vmatpush3.bf16.msra.mxu1 %v2254_v62  ;;  %v495_v62 = vld [vmem:[%s3865_s3 + $0x288] sm:$0xff] }
 0x130   :  { %2257 = vmatprep.subr.bf16.mxu1 %v2256_v63  ;;  %v2307_v63 = vpack.c.bf16 %v495_v62, %v494_v61  ;;  %v660_v61 = vld [vmem:[%s3865_s3 + $0x2d8] sm:$0xff]  ;;  %v667_v62 = vld [vmem:[%s3865_s3 + $0x310] sm:$0xff] }
 0x131   :  { %v2352_v1 = vpack.c.bf16 %v668_v0, %v667_v62  ;;  %v1002_v62 = vld [vmem:[%s3867_s4 + $0x98] sm:$0xff] }
 0x133   :  { %2259 = vmatpush3.bf16.msra.mxu1 %v2258_v5  ;;  %v497_v5 = vld [vmem:[%s3865_s3 + $0x298] sm:$0xff] }
 0x134   :  { %2261 = vmatprep.subr.bf16.mxu1 %v2260_v6  ;;  %v2311_v6 = vpack.c.bf16 %v497_v5, %v496_v4  ;;  %v819_v4 = vld [vmem:[%s3867_s4 + $0x8] sm:$0xff] }
 0x137   :  { %2263 = vmatpush3.bf16.msra.mxu1 %v2262_v11  ;;  %v2533_v11 = vmov 113  }
 0x138   :  { %2265 = vmatprep.subr.bf16.mxu1 %v2264_v12  ;;  %2528 = vset.pattern.permute.xlu0 %v2533_v11  ;;  %v192_v12 = vld [vmem:[%s3866_s1 + $0x401] ss:$0 sm:$0xff]  ;;  %v454_v11 = vld [vmem:[%s3866_s1 + $0x402] ss:$0 sm:$0xff] }
 0x139   :  { %647 = vperm.xlu0 %2528, %v2658_v44  }
 0x13b   :  { %2267 = vmatpush3.bf16.msra.mxu1 %v2266_v17 }
 0x13c   :  { %2284 = vmatprep.subr.bf16.mxu1 %v2283_v18 }
 0x13e   :  { %375 = vmatmul.mubr.f32.vlgmr.msra.gmra.mrb[2].mxu1 %v2822_v60 }
 0x13f   :  { %2286 = vmatpush3.bf16.msra.mxu1 %v2285_v26  ;;  %562 = vmatprep.mubr.f32.mxu1 %v2658_v44  ;;  %v458_v44 = vld [vmem:[%s3865_s3 + $0x60] sm:$0xff]  ;;  %v2322_v26 = vpack.c.bf16 %v461_v25, %v460_v24  ;;  %v821_v24 = vld [vmem:[%s3867_s4 + $0x18] sm:$0xff]  ;;  %v828_v25 = vld [vmem:[%s3867_s4 + $0x50] sm:$0xff] }
 0x140   :  { %2288 = vmatprep.subr.bf16.mxu1 %v2287_v27  ;;  %v2319_v22 = vpack.c.bf16 %v459_v19, %v458_v44  ;;  %v462_v27 = vld [vmem:[%s3865_s3 + $0x80] sm:$0xff] }
 0x141   :  { %v2325_v29 = vpack.c.bf16 %v463_v28, %v462_v27 }
 0x143   :  { %2290 = vmatpush3.bf16.msra.mxu1 %v2289_v32  ;;  %v2328_v32 = vpack.c.bf16 %v465_v31, %v464_v30  ;;  %v822_v31 = vld [vmem:[%s3867_s4 + $0x20] sm:$0xff] }
 0x144   :  { %2292 = vmatprep.subr.bf16.mxu1 %v2291_v33 }
 0x147   :  { %2294 = vmatpush3.bf16.msra.mxu1 %v2293_v36  ;;  %v653_v36 = vld [vmem:[%s3865_s3 + $0x2a0] sm:$0xff] }
 0x148   :  { %2296 = vmatprep.subr.bf16.mxu1 %v2295_v39  ;;  %v2331_v39 = vpack.c.bf16 %v654_v37, %v653_v36  ;;  %v824_v37 = vld [vmem:[%s3867_s4 + $0x30] sm:$0xff] }
 0x149   :  { %v2366_v40 = vpack.c.bf16 %v825_v38, %v824_v37  ;;  %v1389_v38 = vld [vmem:[%s3866_s1 + $0x48] sm:$0xff] }
 0x14b   :  { %2298 = vmatpush3.bf16.msra.mxu1 %v2297_v46  ;;  %v656_v46 = vld [vmem:[%s3865_s3 + $0x2b8] sm:$0xff] }
 0x14c   :  { %2300 = vmatprep.subr.bf16.mxu1 %v2299_v49  ;;  %v2334_v49 = vpack.c.bf16 %v656_v46, %v655_v45  ;;  %v1000_v45 = vld [vmem:[%s3867_s4 + $0x88] sm:$0xff]  ;;  %v1003_v46 = vld [vmem:[%s3867_s4 + $0xa0] sm:$0xff] }
 0x14f   :  { %2302 = vmatpush3.bf16.msra.mxu1 %v2301_v52  ;;  %v657_v52 = vld [vmem:[%s3865_s3 + $0x2c0] sm:$0xff] }
 0x150   :  { %2304 = vmatprep.subr.bf16.mxu1 %v2303_v56  ;;  %v2337_v55 = vpack.c.bf16 %v658_v54, %v657_v52  ;;  %v665_v56 = vld [vmem:[%s3865_s3 + $0x300] sm:$0xff] }
 0x151   :  { %v2349_v58 = vpack.c.bf16 %v666_v57, %v665_v56 }
 0x153   :  { %2306 = vmatpush3.bf16.msra.mxu1 %v2305_v59  ;;  %v659_v59 = vld [vmem:[%s3865_s3 + $0x2d0] sm:$0xff] }
 0x154   :  { %2308 = vmatprep.subr.bf16.mxu1 %v2307_v63  ;;  %v2340_v63 = vpack.c.bf16 %v660_v61, %v659_v59  ;;  %v1001_v61 = vld [vmem:[%s3867_s4 + $0x90] sm:$0xff] }
 0x155   :  { %v2390_v0 = vpack.c.bf16 %v1002_v62, %v1001_v61  ;;  %v1412_v62 = vld [vmem:[%s3866_s1 + $0x100] sm:$0xff] }
 0x157   :  { %2310 = vmatpush3.bf16.msra.mxu1 %v2309_v2  ;;  %v818_v2 = vld [vmem:[%s3867_s4] sm:$0xff] }
 0x158   :  { %2312 = vmatprep.subr.bf16.mxu1 %v2311_v6  ;;  %v2354_v5 = vpack.c.bf16 %v819_v4, %v818_v2  ;;  %v827_v6 = vld [vmem:[%s3867_s4 + $0x48] sm:$0xff] }
 0x159   :  { %v1207_v4 = vld [vmem:[%s3866_s1 + $0x388] sm:$0xff] }
 0x15b   :  { %2314 = vmatpush3.bf16.msra.mxu1 %v2313_v9 }
 0x15c   :  { %2342 = vmatprep.subr.bf16.mxu1 %v2529_v3 }
 0x15e   :  { %563 = vmatmul.mubr.f32.vlgmr.msra.gmra.mrb[4].mxu1 %v2822_v60  ;;  %v457_v60 = vld [vmem:[%s3865_s3 + $0x58] sm:$0xff] }
 0x15f   :  { %2073 = vmatprep.mubr.msk.f32.mxu1 %vm2530_vm1, %v2531_v53  ;;  %v2316_v17 = vpack.c.bf16 %v457_v60, %v456_v13  ;;  %2344 = vmatpush3.bf16.msra.mxu1 %v2343_v41  ;;  %v638_v60 = vld [vmem:[%s3866_s1 + $0x403] ss:$0 sm:$0xff]  ;;  %v833_v41 = vld [vmem:[%s3867_s4 + $0x78] sm:$0xff] }
 0x160   :  { %2345 = vmatprep.subr.bf16.mxu1 %v2529_v3 }
 0x163   :  { %2347 = vmatpush3.bf16.msra.mxu1 %v2346_v51 }
 0x164   :  { %2348 = vmatprep.subr.bf16.mxu1 %v2529_v3 }
 0x167   :  { %2350 = vmatpush3.bf16.msra.mxu1 %v2349_v58 }
 0x168   :  { %2351 = vmatprep.subr.bf16.mxu1 %v2529_v3 }
 0x16b   :  { %2353 = vmatpush3.bf16.msra.mxu1 %v2352_v1  ;;  %v1006_v1 = vld [vmem:[%s3867_s4 + $0xb8] sm:$0xff] }
 0x1f1   :  { %v263_v14 = vpop.f32.mrb[0].mxu1 }
 0x1f2   :  { %v264_v15 = vadd.f32 %v263_v14, %v192_v12  ;;  %v265_v16 = vpop.f32.mrb[1].mxu1  ;;  %v643_v12 = vpop.permute.xlu0 %642 }
 0x1f4   :  { %v267_v18 = vmax.f32 %v264_v15, 0.0 }
 0x1f6   :  { %2013 = vmatmul.mubr.msk.f32.vlgmr.msra.gmra.mrb[2].mxu0 %vm380_vm2, %v267_v18 }
 0x1f7   :  { %2317 = vmatpush3.bf16.msra.mxu0 %v2316_v17  ;;  %2035 = vmatprep.mubr.msk.f32.mxu0 %vm2530_vm1, %v2531_v53  ;;  %v648_v17 = vpop.permute.xlu0 %647 }
 0x1f8   :  { %2318 = vmatprep.subr.bf16.mxu0 %v2529_v3 }
 0x1fb   :  { %2320 = vmatpush3.bf16.msra.mxu0 %v2319_v22  ;;  %v820_v22 = vld [vmem:[%s3867_s4 + $0x10] sm:$0xff] }
 0x1fc   :  { %2321 = vmatprep.subr.bf16.mxu0 %v2529_v3 }
 0x1ff   :  { %2323 = vmatpush3.bf16.msra.mxu0 %v2322_v26  ;;  %v829_v26 = vld [vmem:[%s3867_s4 + $0x58] sm:$0xff] }
 0x200   :  { %2324 = vmatprep.subr.bf16.mxu0 %v2529_v3  ;;  %v2374_v30 = vpack.c.bf16 %v829_v26, %v828_v25  ;;  %v1210_v26 = vld [vmem:[%s3866_s1 + $0x3c0] sm:$0xff] }
 0x203   :  { %2326 = vmatpush3.bf16.msra.mxu0 %v2325_v29  ;;  %v2358_v29 = vpack.c.bf16 %v821_v24, %v820_v22  ;;  %v1211_v22 = vld [vmem:[%s3866_s1 + $0x3c8] sm:$0xff] }
 0x204   :  { %2327 = vmatprep.subr.bf16.mxu0 %v2529_v3  ;;  %v1213_v24 = vld [vmem:[%s3866_s1 + $0x3e8] sm:$0xff] }
 0x205   :  { %v2406_v25 = vpack.c.bf16 %v1213_v24, %v1211_v22  ;;  %v1444_v22 = vld [vmem:[%s3866_s1 + $0x200] sm:$0xff] }
 0x206   :  { %v1448_v24 = vld [vmem:[%s3866_s1 + $0x220] sm:$0xff] }
 0x207   :  { %2329 = vmatpush3.bf16.msra.mxu0 %v2328_v32  ;;  %v823_v32 = vld [vmem:[%s3867_s4 + $0x28] sm:$0xff] }
 0x208   :  { %2330 = vmatprep.subr.bf16.mxu0 %v2529_v3 }
 0x20a   :  { %2036 = vmatmul.mubr.msk.f32.vlgmr.msra.gmra.mrb[4].mxu0 %vm380_vm2, %v267_v18 }
 0x20b   :  { %2054 = vmatprep.mubr.msk.f32.mxu0 %vm2530_vm1, %v2531_v53  ;;  %2332 = vmatpush3.bf16.msra.mxu0 %v2331_v39  ;;  %v832_v39 = vld [vmem:[%s3867_s4 + $0x70] sm:$0xff] }
 0x20c   :  { %2333 = vmatprep.subr.bf16.mxu0 %v2529_v3 }
 0x20f   :  { %2335 = vmatpush3.bf16.msra.mxu0 %v2334_v49 }
 0x210   :  { %2336 = vmatprep.subr.bf16.mxu0 %v2529_v3 }
 0x211   :  { %v1878_v33 = vpop.f32.mrb[2].mxu1 }
 0x212   :  { %v1879_v34 = vpop.f32.mrb[3].mxu1 }
 0x213   :  { %v1880_v35 = vadd.f32 %v1879_v34, %v1878_v33  ;;  %2338 = vmatpush3.bf16.msra.mxu0 %v2337_v55  ;;  %v830_v33 = vld [vmem:[%s3867_s4 + $0x60] sm:$0xff]  ;;  %v831_v34 = vld [vmem:[%s3867_s4 + $0x68] sm:$0xff] }
 0x214   :  { %2339 = vmatprep.subr.bf16.mxu0 %v2529_v3  ;;  %v826_v3 = vld [vmem:[%s3867_s4 + $0x40] sm:$0xff]  ;;  %v2378_v36 = vpack.c.bf16 %v831_v34, %v830_v33  ;;  %v1387_v33 = vld [vmem:[%s3866_s1 + $0x38] sm:$0xff] }
 0x215   :  { %v2370_v7 = vpack.c.bf16 %v827_v6, %v826_v3  ;;  %v1209_v3 = vld [vmem:[%s3866_s1 + $0x3a8] sm:$0xff]  ;;  %v834_v6 = vld [vmem:[%s3866_s1 + $0x405] ss:$0 sm:$0xff] }
 0x216   :  { %v1380_v34 = vld [vmem:[%s3866_s1] sm:$0xff] }
 0x217   :  { %2341 = vmatpush3.bf16.msra.mxu0 %v2340_v63  ;;  %2371 = vmatprep.subr.bf16.mxu1 %v2370_v7  ;;  %v1005_v63 = vld [vmem:[%s3867_s4 + $0xb0] sm:$0xff] }
 0x218   :  { %2355 = vmatprep.subr.bf16.mxu0 %v2354_v5  ;;  %v2398_v2 = vpack.c.bf16 %v1006_v1, %v1005_v63  ;;  %v1416_v63 = vld [vmem:[%s3866_s1 + $0x120] sm:$0xff]  ;;  %v1425_v1 = vld [vmem:[%s3866_s1 + $0x168] sm:$0xff] }
 0x231   :  { %v1924_v42 = vpop.f32.mrb[4].mxu1 }
 0x232   :  { %v1925_v43 = vpop.f32.mrb[5].mxu1 }
 0x233   :  { %v1926_v48 = vadd.f32 %v1925_v43, %v1924_v42  ;;  %v2382_v42 = vpack.c.bf16 %v833_v41, %v832_v39  ;;  %v999_v43 = vld [vmem:[%s3867_s4 + $0x80] sm:$0xff]  ;;  %v1393_v39 = vld [vmem:[%s3866_s1 + $0x68] sm:$0xff] }
 0x234   :  { %v2386_v47 = vpack.c.bf16 %v1000_v45, %v999_v43  ;;  %v1388_v41 = vld [vmem:[%s3866_s1 + $0x40] sm:$0xff]  ;;  %v1397_v45 = vld [vmem:[%s3866_s1 + $0x88] sm:$0xff] }
 0x2c9   :  { %v450_v8 = vpop.f32.mrb[2].mxu0 }
 0x2ca   :  { %v451_v9 = vadd.f32 %v1880_v35, %v450_v8  ;;  %v2014_v10 = vpop.f32.mrb[3].mxu0  ;;  %v2362_v35 = vpack.c.bf16 %v823_v32, %v822_v31  ;;  %v1383_v31 = vld [vmem:[%s3866_s1 + $0x18] sm:$0xff] }
 0x2cc   :  { %v455_v14 = vadd.f32 %v454_v11, %v451_v9 }
 0x2ce   :  { %v645_v44 = vmul.f32 %v643_v12, %v455_v14  ;;  %v1208_v14 = vld [vmem:[%s3866_s1 + $0x3a0] sm:$0xff] }
 0x2dd   :  { %v634_v13 = vpop.f32.mrb[4].mxu0 }
 0x2de   :  { %v635_v15 = vadd.f32 %v1926_v48, %v634_v13  ;;  %v2037_v16 = vpop.f32.mrb[5].mxu0  ;;  %v1004_v48 = vld [vmem:[%s3867_s4 + $0xa8] sm:$0xff] }
 0x2df   :  { %v2394_v49 = vpack.c.bf16 %v1004_v48, %v1003_v46  ;;  %v1401_v46 = vld [vmem:[%s3866_s1 + $0xa8] sm:$0xff]  ;;  %v1396_v48 = vld [vmem:[%s3866_s1 + $0x80] sm:$0xff] }
 0x2e0   :  { %v639_v18 = vadd.f32 %v638_v60, %v635_v15  ;;  %v1206_v60 = vld [vmem:[%s3866_s1 + $0x380] sm:$0xff] }
 0x2e2   :  { %v650_v19 = vmul.f32 %v648_v17, %v639_v18  ;;  %v2404_v18 = vpack.c.bf16 %v1208_v14, %v1206_v60 }
 0x2e4   :  { %v651_v27 = vadd.f32 %v650_v19, %v645_v44 }
 0x2e6   :  { %v652_v28 = vmax.f32 %v651_v27, 0.0  ;;  %v1212_v27 = vld [vmem:[%s3866_s1 + $0x3e0] sm:$0xff] }
 0x2e8   :  { %2055 = vmatmul.mubr.msk.f32.vlgmr.msra.gmra.mrb[6].mxu0 %vm670_vm3, %v652_v28  ;;  %2074 = vmatmul.mubr.msk.f32.vlgmr.msra.gmra.mrb[6].mxu1 %vm670_vm3, %v652_v28  ;;  %v2408_v28 = vpack.c.bf16 %v1212_v27, %v1210_v26  ;;  %v1457_v26 = vld [vmem:[%s3866_s1 + $0x268] sm:$0xff]  ;;  %v2444_v27 = vpack.c.bf16 %v1448_v24, %v1444_v22  ;;  %v1415_v22 = vld [vmem:[%s3866_s1 + $0x118] sm:$0xff] }
 0x2e9   :  { %2357 = vmatpush3.bf16.msra.mxu0 %v2354_v5  ;;  %2373 = vmatpush3.bf16.msra.mxu1 %v2370_v7  ;;  %v2402_v5 = vpack.c.bf16 %v1209_v3, %v1207_v4  ;;  %v1420_v3 = vld [vmem:[%s3866_s1 + $0x140] sm:$0xff]  ;;  %v1419_v24 = vld [vmem:[%s3866_s1 + $0x138] sm:$0xff] }
 0x2ea   :  { %2359 = vmatprep.subr.bf16.mxu0 %v2358_v29  ;;  %2375 = vmatprep.subr.bf16.mxu1 %v2374_v30 }
 0x2ed   :  { %2361 = vmatpush3.bf16.msra.mxu0 %v2358_v29  ;;  %2377 = vmatpush3.bf16.msra.mxu1 %v2374_v30  ;;  %v1381_v29 = vld [vmem:[%s3866_s1 + $0x8] sm:$0xff] }
 0x2ee   :  { %2363 = vmatprep.subr.bf16.mxu0 %v2362_v35  ;;  %2379 = vmatprep.subr.bf16.mxu1 %v2378_v36  ;;  %v1385_v30 = vld [vmem:[%s3866_s1 + $0x28] sm:$0xff] }
 0x2ef   :  { %v2410_v32 = vpack.c.bf16 %v1385_v30, %v1381_v29  ;;  %v1452_v29 = vld [vmem:[%s3866_s1 + $0x240] sm:$0xff] }
 0x2f0   :  { %v1456_v30 = vld [vmem:[%s3866_s1 + $0x260] sm:$0xff] }
 0x2f1   :  { %2365 = vmatpush3.bf16.msra.mxu0 %v2362_v35  ;;  %2381 = vmatpush3.bf16.msra.mxu1 %v2378_v36  ;;  %v1384_v35 = vld [vmem:[%s3866_s1 + $0x20] sm:$0xff]  ;;  %v2466_v36 = vpack.c.bf16 %v1387_v33, %v1383_v31  ;;  %v1461_v31 = vld [vmem:[%s3866_s1 + $0x288] sm:$0xff]  ;;  %v2448_v33 = vpack.c.bf16 %v1456_v30, %v1452_v29  ;;  %v1414_v29 = vld [vmem:[%s3866_s1 + $0x110] sm:$0xff] }
 0x2f2   :  { %2367 = vmatprep.subr.bf16.mxu0 %v2366_v40  ;;  %2383 = vmatprep.subr.bf16.mxu1 %v2382_v42  ;;  %v2412_v37 = vpack.c.bf16 %v1384_v35, %v1380_v34  ;;  %v1460_v35 = vld [vmem:[%s3866_s1 + $0x280] sm:$0xff]  ;;  %v1418_v30 = vld [vmem:[%s3866_s1 + $0x130] sm:$0xff] }
 0x2f5   :  { %2369 = vmatpush3.bf16.msra.mxu0 %v2366_v40  ;;  %2385 = vmatpush3.bf16.msra.mxu1 %v2382_v42  ;;  %v2414_v40 = vpack.c.bf16 %v1393_v39, %v1389_v38  ;;  %v1392_v42 = vld [vmem:[%s3866_s1 + $0x60] sm:$0xff]  ;;  %v1473_v38 = vld [vmem:[%s3866_s1 + $0x2e8] sm:$0xff] }
 0x2f6   :  { %2387 = vmatprep.subr.bf16.mxu0 %v2386_v47  ;;  %2395 = vmatprep.subr.bf16.mxu1 %v2394_v49  ;;  %v2416_v43 = vpack.c.bf16 %v1392_v42, %v1388_v41  ;;  %v1468_v41 = vld [vmem:[%s3866_s1 + $0x2c0] sm:$0xff] }
 0x2f7   :  { %v1472_v42 = vld [vmem:[%s3866_s1 + $0x2e0] sm:$0xff] }
 0x3bb   :  { %v740_v51 = vpop.f32.mrb[6].mxu0  ;;  %v810_v52 = vpop.f32.mrb[6].mxu1 }
 0x3bc   :  { %v814_v54 = vadd.f32 %v740_v51, %v669_v50  ;;  %v815_v55 = vadd.f32 %v810_v52, %v669_v50  ;;  %v2056_v56 = vpop.f32.mrb[7].mxu0  ;;  %v2075_v57 = vpop.f32.mrb[7].mxu1  ;;  %v1405_v51 = vld [vmem:[%s3866_s1 + $0xc8] sm:$0xff] }
 0x3bd   :  { %v1409_v52 = vld [vmem:[%s3866_s1 + $0xe8] sm:$0xff]  ;;  %v1408_v56 = vld [vmem:[%s3866_s1 + $0xe0] sm:$0xff] }
 0x3be   :  { %v816_v58 = vmax.f32 %v814_v54, 0.0  ;;  %v817_v59 = vmax.f32 %v815_v55, 0.0  ;;  %v2422_v54 = vpack.c.bf16 %v1409_v52, %v1405_v51  ;;  %v1404_v55 = vld [vmem:[%s3866_s1 + $0xc0] sm:$0xff]  ;;  %v1413_v57 = vld [vmem:[%s3866_s1 + $0x108] sm:$0xff]  ;;  %v1382_v51 = vld [vmem:[%s3866_s1 + $0x10] sm:$0xff] }
 0x3bf   :  { %v1386_v52 = vld [vmem:[%s3866_s1 + $0x30] sm:$0xff] }
 0x3c0   :  { %2092 = vmatprep.mubr.msk.f32.mxu0 %vm670_vm3, %v816_v58  ;;  %2111 = vmatprep.mubr.msk.f32.mxu1 %vm670_vm3, %v816_v58  ;;  %v1417_v58 = vld [vmem:[%s3866_s1 + $0x128] sm:$0xff] }
 0x3c1   :  { %2093 = vmatmul.mubr.msk.f32.vlgmr.msra.gmra.mrb[8].mxu0 %vm670_vm3, %v817_v59  ;;  %2112 = vmatmul.mubr.msk.f32.vlgmr.msra.gmra.mrb[8].mxu1 %vm670_vm3, %v817_v59  ;;  %v2424_v59 = vpack.c.bf16 %v1408_v56, %v1404_v55  ;;  %v2426_v61 = vpack.c.bf16 %v1417_v58, %v1413_v57  ;;  %v1391_v56 = vld [vmem:[%s3866_s1 + $0x58] sm:$0xff] }
 0x3c2   :  { %2389 = vmatpush3.bf16.msra.mxu0 %v2386_v47  ;;  %2397 = vmatpush3.bf16.msra.mxu1 %v2394_v49  ;;  %v2418_v47 = vpack.c.bf16 %v1401_v46, %v1397_v45  ;;  %v1400_v49 = vld [vmem:[%s3866_s1 + $0xa0] sm:$0xff]  ;;  %v1481_v45 = vld [vmem:[%s3866_s1 + $0x328] sm:$0xff]  ;;  %v2456_v46 = vpack.c.bf16 %v1472_v42, %v1468_v41  ;;  %v1395_v57 = vld [vmem:[%s3866_s1 + $0x78] sm:$0xff] }
 0x3c3   :  { %2391 = vmatprep.subr.bf16.mxu0 %v2390_v0  ;;  %2399 = vmatprep.subr.bf16.mxu1 %v2398_v2  ;;  %v2420_v50 = vpack.c.bf16 %v1400_v49, %v1396_v48  ;;  %v3471_v48 = vld [vmem:[%s3866_s1 + $0x406] ss:$0 sm:$0xff] }
 0x3c6   :  { %2393 = vmatpush3.bf16.msra.mxu0 %v2390_v0  ;;  %2401 = vmatpush3.bf16.msra.mxu1 %v2398_v2  ;;  %v1421_v0 = vld [vmem:[%s3866_s1 + $0x148] sm:$0xff]  ;;  %v2428_v2 = vpack.c.bf16 %v1416_v63, %v1412_v62 }
 0x3c7   :  { %2403 = vmatprep.subr.bf16.mxu0 %v2402_v5  ;;  %2411 = vmatprep.subr.bf16.mxu1 %v2410_v32  ;;  %v2430_v4 = vpack.c.bf16 %v1425_v1, %v1421_v0  ;;  %v1424_v5 = vld [vmem:[%s3866_s1 + $0x160] sm:$0xff]  ;;  %v1465_v32 = vld [vmem:[%s3866_s1 + $0x2a8] sm:$0xff]  ;;  %v2470_v1 = vpack.c.bf16 %v1395_v57, %v1391_v56  ;;  %v1438_v56 = vld [vmem:[%s3866_s1 + $0x1d0] sm:$0xff] }
 0x3c8   :  { %v2450_v34 = vpack.c.bf16 %v1465_v32, %v1461_v31  ;;  %v1423_v31 = vld [vmem:[%s3866_s1 + $0x158] sm:$0xff]  ;;  %v1442_v57 = vld [vmem:[%s3866_s1 + $0x1f0] sm:$0xff] }
 0x3c9   :  { %v1427_v32 = vld [vmem:[%s3866_s1 + $0x178] sm:$0xff] }
 0x494   :  { %v2094_v7 = vpop.f32.mrb[8].mxu0  ;;  %v2113_v8 = vpop.f32.mrb[8].mxu1 }
 0x495   :  { %v992_v9 = vadd.f32 %v2094_v7, %v834_v6  ;;  %v907_v10 = vpop.f32.mrb[9].mxu0  ;;  %v982_v11 = vpop.f32.mrb[9].mxu1  ;;  %v994_v17 = vadd.f32 %v2113_v8, %v834_v6  ;;  %v1433_v7 = vld [vmem:[%s3866_s1 + $0x1a8] sm:$0xff]  ;;  %v2432_v8 = vpack.c.bf16 %v1424_v5, %v1420_v3 }
 0x496   :  { %v991_v12 = vadd.f32 %v907_v10, %v834_v6  ;;  %v993_v13 = vadd.f32 %v982_v11, %v834_v6  ;;  %v1429_v6 = vld [vmem:[%s3866_s1 + $0x188] sm:$0xff]  ;;  %v1428_v10 = vld [vmem:[%s3866_s1 + $0x180] sm:$0xff] }
 0x497   :  { %v996_v16 = vmax.f32 %v992_v9, 0.0  ;;  %v998_v19 = vmax.f32 %v994_v17, 0.0  ;;  %v2434_v9 = vpack.c.bf16 %v1433_v7, %v1429_v6  ;;  %v1432_v11 = vld [vmem:[%s3866_s1 + $0x1a0] sm:$0xff]  ;;  %v1445_v17 = vld [vmem:[%s3866_s1 + $0x208] sm:$0xff]  ;;  %v1399_v6 = vld [vmem:[%s3866_s1 + $0x98] sm:$0xff] }
 0x498   :  { %v995_v15 = vmax.f32 %v991_v12, 0.0  ;;  %v997_v44 = vmax.f32 %v993_v13, 0.0  ;;  %v1437_v12 = vld [vmem:[%s3866_s1 + $0x1c8] sm:$0xff]  ;;  %v2436_v60 = vpack.c.bf16 %v1432_v11, %v1428_v10  ;;  %v1403_v7 = vld [vmem:[%s3866_s1 + $0xb8] sm:$0xff] }
 0x499   :  { %v1441_v13 = vld [vmem:[%s3866_s1 + $0x1e8] sm:$0xff]  ;;  %v2474_v11 = vpack.c.bf16 %v1403_v7, %v1399_v6  ;;  %v1463_v6 = vld [vmem:[%s3866_s1 + $0x298] sm:$0xff] }
 0x49a   :  { %2122 = vmatprep.mubr.msk.f32.mxu0 %vm193_vm0, %v995_v15  ;;  %2136 = vmatprep.mubr.msk.f32.mxu1 %vm193_vm0, %v995_v15  ;;  %v2438_v14 = vpack.c.bf16 %v1441_v13, %v1437_v12  ;;  %v1436_v15 = vld [vmem:[%s3866_s1 + $0x1c0] sm:$0xff]  ;;  %v1398_v12 = vld [vmem:[%s3866_s1 + $0x90] sm:$0xff]  ;;  %v1467_v7 = vld [vmem:[%s3866_s1 + $0x2b8] sm:$0xff] }
 0x49b   :  { %2123 = vmatmul.mubr.msk.f32.vlgmr.msra.gmra.mrb[10].mxu0 %vm193_vm0, %v996_v16  ;;  %2137 = vmatmul.mubr.msk.f32.vlgmr.msra.gmra.mrb[10].mxu1 %vm193_vm0, %v996_v16  ;;  %v1440_v16 = vld [vmem:[%s3866_s1 + $0x1e0] sm:$0xff]  ;;  %v1402_v13 = vld [vmem:[%s3866_s1 + $0xb0] sm:$0xff] }
 0x49c   :  { %2125 = vmatprep.mubr.msk.f32.mxu0 %vm193_vm0, %v997_v44  ;;  %2139 = vmatprep.mubr.msk.f32.mxu1 %vm193_vm0, %v997_v44  ;;  %v2440_v44 = vpack.c.bf16 %v1440_v16, %v1436_v15  ;;  %v2476_v15 = vpack.c.bf16 %v1402_v13, %v1398_v12  ;;  %v1471_v12 = vld [vmem:[%s3866_s1 + $0x2d8] sm:$0xff] }
 0x49d   :  { %2405 = vmatpush1.bf16.msra.mxu0 %v2404_v18  ;;  %2413 = vmatpush1.bf16.msra.mxu1 %v2412_v37  ;;  %v1449_v18 = vld [vmem:[%s3866_s1 + $0x228] sm:$0xff]  ;;  %v1475_v13 = vld [vmem:[%s3866_s1 + $0x2f8] sm:$0xff] }
 0x49e   :  { %2407 = vmatprep.subr.bf16.mxu0 %v2406_v25  ;;  %2415 = vmatprep.subr.bf16.mxu1 %v2414_v40  ;;  %v1453_v25 = vld [vmem:[%s3866_s1 + $0x248] sm:$0xff] }
 0x49f   :  { %2126 = vmatmul.mubr.msk.f32.gmra.mrb[12].mxu0 %vm193_vm0, %v998_v19  ;;  %2140 = vmatmul.mubr.msk.f32.gmra.mrb[12].mxu1 %vm193_vm0, %v998_v19  ;;  %v2442_v19 = vpack.c.bf16 %v1449_v18, %v1445_v17  ;;  %v1469_v37 = vld [vmem:[%s3866_s1 + $0x2c8] sm:$0xff] }
 0x4a0   :  { %1315 = vmatprep.mubr.f32.mxu0 %v2531_v53  ;;  %v2454_v40 = vpack.c.bf16 %v1473_v38, %v1469_v37  ;;  %v1422_v37 = vld [vmem:[%s3866_s1 + $0x150] sm:$0xff] }
 0x4a1   :  { %2409 = vmatpush1.bf16.msra.mxu0 %v2408_v28  ;;  %2417 = vmatpush1.bf16.msra.mxu1 %v2416_v43  ;;  %v2446_v28 = vpack.c.bf16 %v1457_v26, %v1453_v25  ;;  %v1477_v43 = vld [vmem:[%s3866_s1 + $0x308] sm:$0xff]  ;;  %v1426_v38 = vld [vmem:[%s3866_s1 + $0x170] sm:$0xff] }
 0x4a2   :  { %2467 = vmatprep.subr.bf16.mxu0 %v2466_v36  ;;  %2419 = vmatprep.subr.bf16.mxu1 %v2418_v47  ;;  %v1464_v36 = vld [vmem:[%s3866_s1 + $0x2a0] sm:$0xff]  ;;  %v2458_v47 = vpack.c.bf16 %v1481_v45, %v1477_v43  ;;  %v2488_v41 = vpack.c.bf16 %v1426_v38, %v1422_v37  ;;  %v1486_v38 = vld [vmem:[%s3866_s1 + $0x350] sm:$0xff] }
 0x4a3   :  { %v2452_v39 = vpack.c.bf16 %v1464_v36, %v1460_v35  ;;  %v2486_v36 = vpack.c.bf16 %v1427_v32, %v1423_v31  ;;  %v1487_v31 = vld [vmem:[%s3866_s1 + $0x358] sm:$0xff] }
 0x4a5   :  { %2421 = vmatpush1.bf16.msra.mxu1 %v2420_v50 }
 0x4a6   :  { %2423 = vmatprep.subr.bf16.mxu1 %v2422_v54 }
 0x4a9   :  { %2425 = vmatpush1.bf16.msra.mxu1 %v2424_v59  ;;  %v2468_v59 = vpack.c.bf16 %v1386_v52, %v1382_v51 }
 0x4aa   :  { %2427 = vmatprep.subr.bf16.mxu1 %v2426_v61 }
 0x4ad   :  { %2429 = vmatpush1.bf16.msra.mxu1 %v2428_v2  ;;  %v1390_v2 = vld [vmem:[%s3866_s1 + $0x50] sm:$0xff] }
 0x4ae   :  { %2431 = vmatprep.subr.bf16.mxu1 %v2430_v4  ;;  %v1394_v4 = vld [vmem:[%s3866_s1 + $0x70] sm:$0xff] }
 0x4b1   :  { %2433 = vmatpush1.bf16.msra.mxu1 %v2432_v8  ;;  %v2472_v8 = vpack.c.bf16 %v1394_v4, %v1390_v2 }
 0x4b2   :  { %2435 = vmatprep.subr.bf16.mxu1 %v2434_v9 }
 0x4b5   :  { %2437 = vmatpush1.bf16.msra.mxu1 %v2436_v60  ;;  %v1407_v60 = vld [vmem:[%s3866_s1 + $0xd8] sm:$0xff] }
 0x4b6   :  { %2439 = vmatprep.subr.bf16.mxu1 %v2438_v14  ;;  %v1411_v14 = vld [vmem:[%s3866_s1 + $0xf8] sm:$0xff] }
 0x4b7   :  { %v2478_v18 = vpack.c.bf16 %v1411_v14, %v1407_v60  ;;  %v2510_v14 = vpack.c.bf16 %v1475_v13, %v1471_v12 }
 0x4b9   :  { %2441 = vmatpush1.bf16.msra.mxu1 %v2440_v44  ;;  %v1406_v44 = vld [vmem:[%s3866_s1 + $0xd0] sm:$0xff] }
 0x4ba   :  { %2443 = vmatprep.subr.bf16.mxu1 %v2442_v19  ;;  %v1410_v19 = vld [vmem:[%s3866_s1 + $0xf0] sm:$0xff] }
 0x4bb   :  { %v2480_v25 = vpack.c.bf16 %v1410_v19, %v1406_v44 }
 0x4bd   :  { %2445 = vmatpush1.bf16.msra.mxu1 %v2444_v27 }
 0x4be   :  { %2447 = vmatprep.subr.bf16.mxu1 %v2446_v28  ;;  %v2482_v28 = vpack.c.bf16 %v1419_v24, %v1415_v22  ;;  %v1476_v22 = vld [vmem:[%s3866_s1 + $0x300] sm:$0xff] }
 0x4bf   :  { %v1480_v24 = vld [vmem:[%s3866_s1 + $0x320] sm:$0xff] }
 0x4c1   :  { %2449 = vmatpush1.bf16.msra.mxu1 %v2448_v33  ;;  %v2484_v33 = vpack.c.bf16 %v1418_v30, %v1414_v29  ;;  %v1485_v29 = vld [vmem:[%s3866_s1 + $0x348] sm:$0xff] }
 0x4c2   :  { %2451 = vmatprep.subr.bf16.mxu1 %v2450_v34  ;;  %v1489_v30 = vld [vmem:[%s3866_s1 + $0x368] sm:$0xff] }
 0x4c3   :  { %v2462_v32 = vpack.c.bf16 %v1489_v30, %v1485_v29 }
 0x4c5   :  { %2453 = vmatpush1.bf16.msra.mxu1 %v2452_v39  ;;  %v1431_v39 = vld [vmem:[%s3866_s1 + $0x198] sm:$0xff] }
 0x4c6   :  { %2455 = vmatprep.subr.bf16.mxu1 %v2454_v40  ;;  %v1435_v40 = vld [vmem:[%s3866_s1 + $0x1b8] sm:$0xff] }
 0x4c7   :  { %v2490_v45 = vpack.c.bf16 %v1435_v40, %v1431_v39  ;;  %v1490_v39 = vld [vmem:[%s3866_s1 + $0x370] sm:$0xff] }
 0x4c8   :  { %v2520_v40 = vpack.c.bf16 %v1490_v39, %v1486_v38 }
 0x4c9   :  { %2457 = vmatpush1.bf16.msra.mxu1 %v2456_v46  ;;  %v1430_v46 = vld [vmem:[%s3866_s1 + $0x190] sm:$0xff] }
 0x4ca   :  { %2459 = vmatprep.subr.bf16.mxu1 %v2458_v47  ;;  %v1434_v47 = vld [vmem:[%s3866_s1 + $0x1b0] sm:$0xff] }
 0x4cb   :  { %v2492_v51 = vpack.c.bf16 %v1434_v47, %v1430_v46 }
 0x56e   :  { %v2124_v49 = vpop.f32.mrb[10].mxu0  ;;  %v2138_v50 = vpop.f32.mrb[10].mxu1 }
 0x56f   :  { %v1086_v54 = vpop.f32.mrb[11].mxu0  ;;  %v1171_v55 = vpop.f32.mrb[11].mxu1  ;;  %v1191_v61 = vadd.f32 %v2124_v49, %v3471_v48  ;;  %v1195_v34 = vadd.f32 %v2138_v50, %v3471_v48  ;;  %v1439_v49 = vld [vmem:[%s3866_s1 + $0x1d8] sm:$0xff] }
 0x570   :  { %v1190_v58 = vadd.f32 %v1086_v54, %v3471_v48  ;;  %v1194_v26 = vadd.f32 %v1171_v55, %v3471_v48  ;;  %v1443_v50 = vld [vmem:[%s3866_s1 + $0x1f8] sm:$0xff] }
 0x571   :  { %v1199_v9 = vmax.f32 %v1191_v61, 0.0  ;;  %v1203_v42 = vmax.f32 %v1195_v34, 0.0  ;;  %v2494_v55 = vpack.c.bf16 %v1443_v50, %v1439_v49  ;;  %v1484_v34 = vld [vmem:[%s3866_s1 + $0x340] sm:$0xff] }
 0x572   :  { %v1198_v62 = vmax.f32 %v1190_v58, 0.0  ;;  %v2127_v63 = vpop.f32.mrb[12].mxu0  ;;  %v3487_v0 = vpop.f32.mrb[12].mxu1  ;;  %v1202_v35 = vmax.f32 %v1194_v26, 0.0  ;;  %v1447_v58 = vld [vmem:[%s3866_s1 + $0x218] sm:$0xff]  ;;  %v2460_v26 = vpack.c.bf16 %v1480_v24, %v1476_v22 }
 0x573   :  { %v1096_v3 = vpop.f32.mrb[13].mxu0  ;;  %v1181_v5 = vpop.f32.mrb[13].mxu1  ;;  %v1193_v16 = vadd.f32 %v2127_v63, %v3471_v48  ;;  %v1197_v52 = vadd.f32 %v3487_v0, %v3471_v48  ;;  %v1446_v63 = vld [vmem:[%s3866_s1 + $0x210] sm:$0xff] }
 0x574   :  { %1821 = vmatmul.mubr.msk.f32.vlgmr.msra.gmra.mrb[14].mxu0 %vm193_vm0, %v1198_v62  ;;  %v1192_v10 = vadd.f32 %v1096_v3, %v3471_v48  ;;  %v1196_v43 = vadd.f32 %v1181_v5, %v3471_v48  ;;  %v2496_v48 = vpack.c.bf16 %v1442_v57, %v1438_v56  ;;  %v1450_v0 = vld [vmem:[%s3866_s1 + $0x230] sm:$0xff]  ;;  %2461 = vmatpush1.bf16.msra.mxu1 %v2460_v26 }
 0x575   :  { %1321 = vmatprep.mubr.f32.mxu0 %v2531_v53  ;;  %2469 = vmatpush1.bf16.msra.mxu0 %v2468_v59  ;;  %v1201_v27 = vmax.f32 %v1193_v16, 0.0  ;;  %v1451_v59 = vld [vmem:[%s3866_s1 + $0x238] sm:$0xff]  ;;  %v1205_v61 = vmax.f32 %v1197_v52, 0.0  ;;  %v2500_v2 = vpack.c.bf16 %v1450_v0, %v1446_v63  ;;  %v1454_v3 = vld [vmem:[%s3866_s1 + $0x250] sm:$0xff] }
 0x576   :  { %2471 = vmatprep.subr.bf16.mxu0 %v2470_v1  ;;  %v1200_v17 = vmax.f32 %v1192_v10, 0.0  ;;  %v1204_v54 = vmax.f32 %v1196_v43, 0.0  ;;  %v2498_v62 = vpack.c.bf16 %v1451_v59, %v1447_v58  ;;  %v1455_v1 = vld [vmem:[%s3866_s1 + $0x258] sm:$0xff]  ;;  %v1458_v5 = vld [vmem:[%s3866_s1 + $0x270] sm:$0xff]  ;;  %2463 = vmatprep.subr.bf16.mxu1 %v2462_v32 }
 0x577   :  { %v1462_v10 = vld [vmem:[%s3866_s1 + $0x290] sm:$0xff] }
 0x578   :  { %1822 = vmatmul.mubr.msk.f32.gmra.mrb[16].mxu0 %vm193_vm0, %v1199_v9  ;;  %v2506_v9 = vpack.c.bf16 %v1467_v7, %v1463_v6  ;;  %v1474_v16 = vld [vmem:[%s3866_s1 + $0x2f0] sm:$0xff] }
 0x579   :  { %1327 = vmatprep.mubr.f32.mxu0 %v2531_v53  ;;  %2473 = vmatpush1.bf16.msra.mxu0 %v2472_v8  ;;  %v2504_v8 = vpack.c.bf16 %v1458_v5, %v1454_v3  ;;  %v1829_v32 = vld [vmem:[%s3866_s1 + $0x420] ss:$8 sm:$0xf] }
 0x57a   :  { %2475 = vmatprep.subr.bf16.mxu0 %v2474_v11  ;;  %v1466_v11 = vld [vmem:[%s3866_s1 + $0x2b0] sm:$0xff] }
 0x57b   :  { %v2508_v60 = vpack.c.bf16 %v1466_v11, %v1462_v10 }
 0x57c   :  { %1823 = vmatmul.mubr.msk.f32.gmra.mrb[18].mxu0 %vm193_vm0, %v1200_v17  ;;  %v1479_v17 = vld [vmem:[%s3866_s1 + $0x318] sm:$0xff] }
 0x57d   :  { %1333 = vmatprep.mubr.f32.mxu0 %v2531_v53  ;;  %2477 = vmatpush1.bf16.msra.mxu0 %v2476_v15  ;;  %v1470_v15 = vld [vmem:[%s3866_s1 + $0x2d0] sm:$0xff] }
 0x57e   :  { %2479 = vmatprep.subr.bf16.mxu0 %v2478_v18  ;;  %v1483_v18 = vld [vmem:[%s3866_s1 + $0x338] sm:$0xff]  ;;  %v2512_v44 = vpack.c.bf16 %v1474_v16, %v1470_v15 }
 0x57f   :  { %v2514_v19 = vpack.c.bf16 %v1483_v18, %v1479_v17 }
 0x580   :  { %1824 = vmatmul.mubr.msk.f32.gmra.mrb[20].mxu0 %vm193_vm0, %v1201_v27  ;;  %v1482_v27 = vld [vmem:[%s3866_s1 + $0x330] sm:$0xff] }
 0x581   :  { %1339 = vmatprep.mubr.f32.mxu0 %v2531_v53  ;;  %2481 = vmatpush1.bf16.msra.mxu0 %v2480_v25  ;;  %v1478_v25 = vld [vmem:[%s3866_s1 + $0x310] sm:$0xff] }
 0x582   :  { %2483 = vmatprep.subr.bf16.mxu0 %v2482_v28  ;;  %v2516_v28 = vpack.c.bf16 %v1482_v27, %v1478_v25 }
 0x584   :  { %1825 = vmatmul.mubr.msk.f32.gmra.mrb[22].mxu0 %vm193_vm0, %v1202_v35  ;;  %v1488_v35 = vld [vmem:[%s3866_s1 + $0x360] sm:$0xff] }
 0x585   :  { %1345 = vmatprep.mubr.f32.mxu0 %v2531_v53  ;;  %2485 = vmatpush1.bf16.msra.mxu0 %v2484_v33  ;;  %v1491_v33 = vld [vmem:[%s3866_s1 + $0x378] sm:$0xff]  ;;  %v2464_v37 = vpack.c.bf16 %v1488_v35, %v1484_v34  ;;  %v3726_v34 = vrot.slane %v1829_v32, %v2876_v21 }
 0x586   :  { %2487 = vmatprep.subr.bf16.mxu0 %v2486_v36  ;;  %v2518_v36 = vpack.c.bf16 %v1491_v33, %v1487_v31  ;;  %v1505_v31 = vsub.s32 2, %v2873_v20  ;;  %v1509_v33 = vsub.s32 3, %v2873_v20 }
 0x587   :  { %2465 = vmatpush1.bf16.msra.mxu1 %v2464_v37  ;;  %v3733_v37 = vrot.slane %v1829_v32, %v2882_v23 }
 0x588   :  { %1826 = vmatmul.mubr.msk.f32.gmra.mrb[24].mxu0 %vm193_vm0, %v1203_v42  ;;  %v3728_v35 = vrot.slane %v1829_v32, %v1505_v31 }
 0x589   :  { %1351 = vmatprep.mubr.f32.mxu0 %v2531_v53  ;;  %2489 = vmatpush1.bf16.msra.mxu0 %v2488_v41  ;;  %v1820_v41 = vld [vmem:[%s3866_s1 + $0x407] ss:$8 sm:$0x3] }
 0x58a   :  { %2491 = vmatprep.subr.bf16.mxu0 %v2490_v45  ;;  %v3683_v42 = vrot.slane %v1820_v41, %v2876_v21  ;;  %v3686_v43 = vrot.slane %v1820_v41, %v2882_v23 }
 0x58c   :  { %1827 = vmatmul.mubr.msk.f32.gmra.mrb[26].mxu0 %vm193_vm0, %v1204_v54 }
 0x58d   :  { %1357 = vmatprep.mubr.f32.mxu0 %v2531_v53  ;;  %2493 = vmatpush1.bf16.msra.mxu0 %v2492_v51  ;;  %v1459_v53 = vld [vmem:[%s3866_s1 + $0x278] sm:$0xff] }
 0x58e   :  { %2495 = vmatprep.subr.bf16.mxu0 %v2494_v55  ;;  %v2502_v4 = vpack.c.bf16 %v1459_v53, %v1455_v1 }
 0x590   :  { %1828 = vmatmul.mubr.msk.f32.gmra.mrb[28].mxu0 %vm193_vm0, %v1205_v61 }
 0x591   :  { %2497 = vmatpush1.bf16.msra.mxu0 %v2496_v48 }
 0x592   :  { %2499 = vmatprep.subr.bf16.mxu0 %v2498_v62 }
 0x595   :  { %2501 = vmatpush1.bf16.msra.mxu0 %v2500_v2 }
 0x596   :  { %2503 = vmatprep.subr.bf16.mxu0 %v2502_v4 }
 0x599   :  { %2505 = vmatpush1.bf16.msra.mxu0 %v2504_v8 }
 0x59a   :  { %2507 = vmatprep.subr.bf16.mxu0 %v2506_v9 }
 0x59d   :  { %2509 = vmatpush1.bf16.msra.mxu0 %v2508_v60 }
 0x59e   :  { %2511 = vmatprep.subr.bf16.mxu0 %v2510_v14 }
 0x5a1   :  { %2513 = vmatpush1.bf16.msra.mxu0 %v2512_v44 }
 0x5a2   :  { %2515 = vmatprep.subr.bf16.mxu0 %v2514_v19 }
 0x5a5   :  { %2517 = vmatpush1.bf16.msra.mxu0 %v2516_v28 }
 0x5a6   :  { %2519 = vmatprep.subr.bf16.mxu0 %v2518_v36  ;;  %v3730_v36 = vrot.slane %v1829_v32, %v1509_v33 }
 0x5a9   :  { %2521 = vmatpush1.bf16.msra.mxu0 %v2520_v40 }
 0x647   :  { %v1317_v45 = vpop.f32.mrb[14].mxu0 }
 0x648   :  { %v1318_v46 = vadd.f32 %v1317_v45, %v3683_v42  ;;  %v1319_v47 = vpop.f32.mrb[15].mxu0 }
 0x649   :  { %v1320_v49 = vadd.f32 %v1319_v47, %v3686_v43 }
 0x64a   :  { %v1364_v52 = vmax.f32 %v1318_v46, 0.0 }
 0x64b   :  { %v1365_v50 = vmax.f32 %v1320_v49, 0.0  ;;  %v1323_v51 = vpop.f32.mrb[16].mxu0 }
 0x64c   :  { %v1324_v54 = vadd.f32 %v1323_v51, %v3683_v42  ;;  %v1325_v55 = vpop.f32.mrb[17].mxu0 }
 0x64d   :  { %v1326_v56 = vadd.f32 %v1325_v55, %v3686_v43  ;;  %1830 = vmatprep.mubr.msk.f32.mxu1 %vm1515_vm4, %v1365_v50  ;;  %1838 = vmatprep.mubr.msk.f32.mxu0 %vm1515_vm4, %v1365_v50 }
 0x64e   :  { %1605 = vmatmul.mubr.f32.vlgmr.msra.gmra.mrb[14].mxu1 %v1364_v52  ;;  %1718 = vmatmul.mubr.f32.vlgmr.msra.gmra.mrb[30].mxu0 %v1364_v52  ;;  %v1366_v59 = vmax.f32 %v1324_v54, 0.0 }
 0x64f   :  { %v1367_v57 = vmax.f32 %v1326_v56, 0.0  ;;  %v1329_v58 = vpop.f32.mrb[18].mxu0 }
 0x650   :  { %v1330_v48 = vadd.f32 %v1329_v58, %v3683_v42  ;;  %v1331_v61 = vpop.f32.mrb[19].mxu0 }
 0x651   :  { %v1332_v62 = vadd.f32 %v1331_v61, %v3686_v43  ;;  %1831 = vmatprep.mubr.msk.f32.mxu1 %vm1515_vm4, %v1367_v57  ;;  %1839 = vmatprep.mubr.msk.f32.mxu0 %vm1515_vm4, %v1367_v57 }
 0x652   :  { %1611 = vmatmul.mubr.f32.gmra.mrb[16].mxu1 %v1366_v59  ;;  %1724 = vmatmul.mubr.f32.gmra.mrb[32].mxu0 %v1366_v59  ;;  %v1368_v1 = vmax.f32 %v1330_v48, 0.0 }
 0x653   :  { %v1369_v63 = vmax.f32 %v1332_v62, 0.0  ;;  %v1335_v0 = vpop.f32.mrb[20].mxu0 }
 0x654   :  { %v1336_v53 = vadd.f32 %v1335_v0, %v3683_v42  ;;  %v1337_v2 = vpop.f32.mrb[21].mxu0 }
 0x655   :  { %v1338_v4 = vadd.f32 %v1337_v2, %v3686_v43  ;;  %1832 = vmatprep.mubr.msk.f32.mxu1 %vm1515_vm4, %v1369_v63  ;;  %1840 = vmatprep.mubr.msk.f32.mxu0 %vm1515_vm4, %v1369_v63 }
 0x656   :  { %1617 = vmatmul.mubr.f32.gmra.mrb[18].mxu1 %v1368_v1  ;;  %1730 = vmatmul.mubr.f32.gmra.mrb[34].mxu0 %v1368_v1  ;;  %v1370_v6 = vmax.f32 %v1336_v53, 0.0 }
 0x657   :  { %v1371_v3 = vmax.f32 %v1338_v4, 0.0  ;;  %v1341_v5 = vpop.f32.mrb[22].mxu0 }
 0x658   :  { %v1342_v7 = vadd.f32 %v1341_v5, %v3683_v42  ;;  %v1343_v8 = vpop.f32.mrb[23].mxu0 }
 0x659   :  { %v1344_v9 = vadd.f32 %v1343_v8, %v3686_v43  ;;  %1833 = vmatprep.mubr.msk.f32.mxu1 %vm1515_vm4, %v1371_v3  ;;  %1841 = vmatprep.mubr.msk.f32.mxu0 %vm1515_vm4, %v1371_v3 }
 0x65a   :  { %1623 = vmatmul.mubr.f32.gmra.mrb[20].mxu1 %v1370_v6  ;;  %1736 = vmatmul.mubr.f32.gmra.mrb[36].mxu0 %v1370_v6  ;;  %v1372_v12 = vmax.f32 %v1342_v7, 0.0 }
 0x65b   :  { %v1373_v10 = vmax.f32 %v1344_v9, 0.0  ;;  %v1347_v11 = vpop.f32.mrb[24].mxu0 }
 0x65c   :  { %v1348_v13 = vadd.f32 %v1347_v11, %v3683_v42  ;;  %v1349_v60 = vpop.f32.mrb[25].mxu0 }
 0x65d   :  { %v1350_v14 = vadd.f32 %v1349_v60, %v3686_v43  ;;  %1834 = vmatprep.mubr.msk.f32.mxu1 %vm1515_vm4, %v1373_v10  ;;  %1842 = vmatprep.mubr.msk.f32.mxu0 %vm1515_vm4, %v1373_v10 }
 0x65e   :  { %1629 = vmatmul.mubr.f32.gmra.mrb[22].mxu1 %v1372_v12  ;;  %1742 = vmatmul.mubr.f32.gmra.mrb[38].mxu0 %v1372_v12  ;;  %v1374_v17 = vmax.f32 %v1348_v13, 0.0 }
 0x65f   :  { %v1375_v15 = vmax.f32 %v1350_v14, 0.0  ;;  %v1353_v16 = vpop.f32.mrb[26].mxu0 }
 0x660   :  { %v1354_v18 = vadd.f32 %v1353_v16, %v3683_v42  ;;  %v1355_v44 = vpop.f32.mrb[27].mxu0 }
 0x661   :  { %v1356_v19 = vadd.f32 %v1355_v44, %v3686_v43  ;;  %1835 = vmatprep.mubr.msk.f32.mxu1 %vm1515_vm4, %v1375_v15  ;;  %1843 = vmatprep.mubr.msk.f32.mxu0 %vm1515_vm4, %v1375_v15 }
 0x662   :  { %1635 = vmatmul.mubr.f32.gmra.mrb[24].mxu1 %v1374_v17  ;;  %1748 = vmatmul.mubr.f32.gmra.mrb[40].mxu0 %v1374_v17  ;;  %v1376_v25 = vmax.f32 %v1354_v18, 0.0 }
 0x663   :  { %v1377_v22 = vmax.f32 %v1356_v19, 0.0  ;;  %v1359_v24 = vpop.f32.mrb[28].mxu0 }
 0x664   :  { %v1360_v26 = vadd.f32 %v1359_v24, %v3683_v42  ;;  %v1361_v27 = vpop.f32.mrb[29].mxu0 }
 0x665   :  { %v1362_v28 = vadd.f32 %v1361_v27, %v3686_v43  ;;  %1836 = vmatprep.mubr.msk.f32.mxu1 %vm1515_vm4, %v1377_v22  ;;  %1844 = vmatprep.mubr.msk.f32.mxu0 %vm1515_vm4, %v1377_v22 }
 0x666   :  { %1641 = vmatmul.mubr.f32.gmra.mrb[26].mxu1 %v1376_v25  ;;  %1754 = vmatmul.mubr.f32.gmra.mrb[42].mxu0 %v1376_v25  ;;  %v1378_v30 = vmax.f32 %v1360_v26, 0.0 }
 0x667   :  { %v1379_v29 = vmax.f32 %v1362_v28, 0.0 }
 0x669   :  { %1837 = vmatprep.mubr.msk.f32.mxu1 %vm1515_vm4, %v1379_v29  ;;  %1845 = vmatprep.mubr.msk.f32.mxu0 %vm1515_vm4, %v1379_v29 }
 0x66a   :  { %1647 = vmatmul.mubr.f32.gmra.mrb[28].mxu1 %v1378_v30  ;;  %1760 = vmatmul.mubr.f32.gmra.mrb[44].mxu0 %v1378_v30 }
 0x721   :  { %v1606_v38 = vpop.f32.mrb[14].mxu1  ;;  %v1719_v39 = vpop.f32.mrb[30].mxu0 }
 0x722   :  { %v1607_v40 = vadd.f32 %v1606_v38, %v3726_v34  ;;  %v1720_v41 = vadd.f32 %v1719_v39, %v3728_v35  ;;  %v1608_v42 = vpop.f32.mrb[15].mxu1  ;;  %v1721_v43 = vpop.f32.mrb[31].mxu0 }
 0x723   :  { %v1609_v20 = vadd.f32 %v1608_v42, %v3733_v37  ;;  %v1722_v21 = vadd.f32 %v1721_v43, %v3730_v36 }
 0x724   :  { %1766 = vst [vmem:[%s3868_s5] sm:$0xff] %v1607_v40  ;;  %1768 = vst [vmem:[%s3868_s5 + $0x10] sm:$0xff] %v1720_v41 }
 0x725   :  { %1767 = vst [vmem:[%s3868_s5 + $0x8] sm:$0xff] %v1609_v20  ;;  %1769 = vst [vmem:[%s3868_s5 + $0x18] sm:$0xff] %v1722_v21  ;;  %v1612_v23 = vpop.f32.mrb[16].mxu1  ;;  %v1725_v45 = vpop.f32.mrb[32].mxu0 }
 0x726   :  { %v1613_v46 = vadd.f32 %v1612_v23, %v3726_v34  ;;  %v1726_v47 = vadd.f32 %v1725_v45, %v3728_v35  ;;  %v1614_v49 = vpop.f32.mrb[17].mxu1  ;;  %v1727_v50 = vpop.f32.mrb[33].mxu0 }
 0x727   :  { %v1615_v51 = vadd.f32 %v1614_v49, %v3733_v37  ;;  %v1728_v52 = vadd.f32 %v1727_v50, %v3730_v36 }
 0x728   :  { %1770 = vst [vmem:[%s3868_s5 + $0x20] sm:$0xff] %v1613_v46  ;;  %1772 = vst [vmem:[%s3868_s5 + $0x30] sm:$0xff] %v1726_v47 }
 0x729   :  { %1771 = vst [vmem:[%s3868_s5 + $0x28] sm:$0xff] %v1615_v51  ;;  %1773 = vst [vmem:[%s3868_s5 + $0x38] sm:$0xff] %v1728_v52  ;;  %v1618_v54 = vpop.f32.mrb[18].mxu1  ;;  %v1731_v55 = vpop.f32.mrb[34].mxu0 }
 0x72a   :  { %v1619_v56 = vadd.f32 %v1618_v54, %v3726_v34  ;;  %v1732_v57 = vadd.f32 %v1731_v55, %v3728_v35  ;;  %v1620_v58 = vpop.f32.mrb[19].mxu1  ;;  %v1733_v59 = vpop.f32.mrb[35].mxu0 }
 0x72b   :  { %v1621_v48 = vadd.f32 %v1620_v58, %v3733_v37  ;;  %v1734_v61 = vadd.f32 %v1733_v59, %v3730_v36 }
 0x72c   :  { %1774 = vst [vmem:[%s3868_s5 + $0x40] sm:$0xff] %v1619_v56  ;;  %1776 = vst [vmem:[%s3868_s5 + $0x50] sm:$0xff] %v1732_v57 }
 0x72d   :  { %1775 = vst [vmem:[%s3868_s5 + $0x48] sm:$0xff] %v1621_v48  ;;  %1777 = vst [vmem:[%s3868_s5 + $0x58] sm:$0xff] %v1734_v61  ;;  %v1624_v62 = vpop.f32.mrb[20].mxu1  ;;  %v1737_v63 = vpop.f32.mrb[36].mxu0 }
 0x72e   :  { %v1625_v0 = vadd.f32 %v1624_v62, %v3726_v34  ;;  %v1738_v1 = vadd.f32 %v1737_v63, %v3728_v35  ;;  %v1626_v53 = vpop.f32.mrb[21].mxu1  ;;  %v1739_v2 = vpop.f32.mrb[37].mxu0 }
 0x72f   :  { %v1627_v4 = vadd.f32 %v1626_v53, %v3733_v37  ;;  %v1740_v3 = vadd.f32 %v1739_v2, %v3730_v36 }
 0x730   :  { %1778 = vst [vmem:[%s3868_s5 + $0x60] sm:$0xff] %v1625_v0  ;;  %1780 = vst [vmem:[%s3868_s5 + $0x70] sm:$0xff] %v1738_v1 }
 0x731   :  { %1779 = vst [vmem:[%s3868_s5 + $0x68] sm:$0xff] %v1627_v4  ;;  %1781 = vst [vmem:[%s3868_s5 + $0x78] sm:$0xff] %v1740_v3  ;;  %v1630_v5 = vpop.f32.mrb[22].mxu1  ;;  %v1743_v6 = vpop.f32.mrb[38].mxu0 }
 0x732   :  { %v1631_v7 = vadd.f32 %v1630_v5, %v3726_v34  ;;  %v1744_v8 = vadd.f32 %v1743_v6, %v3728_v35  ;;  %v1632_v9 = vpop.f32.mrb[23].mxu1  ;;  %v1745_v10 = vpop.f32.mrb[39].mxu0 }
 0x733   :  { %v1633_v11 = vadd.f32 %v1632_v9, %v3733_v37  ;;  %v1746_v12 = vadd.f32 %v1745_v10, %v3730_v36 }
 0x734   :  { %1782 = vst [vmem:[%s3868_s5 + $0x80] sm:$0xff] %v1631_v7  ;;  %1784 = vst [vmem:[%s3868_s5 + $0x90] sm:$0xff] %v1744_v8 }
 0x735   :  { %1783 = vst [vmem:[%s3868_s5 + $0x88] sm:$0xff] %v1633_v11  ;;  %1785 = vst [vmem:[%s3868_s5 + $0x98] sm:$0xff] %v1746_v12  ;;  %v1636_v13 = vpop.f32.mrb[24].mxu1  ;;  %v1749_v60 = vpop.f32.mrb[40].mxu0 }
 0x736   :  { %v1637_v14 = vadd.f32 %v1636_v13, %v3726_v34  ;;  %v1750_v15 = vadd.f32 %v1749_v60, %v3728_v35  ;;  %v1638_v16 = vpop.f32.mrb[25].mxu1  ;;  %v1751_v17 = vpop.f32.mrb[41].mxu0 }
 0x737   :  { %v1639_v18 = vadd.f32 %v1638_v16, %v3733_v37  ;;  %v1752_v44 = vadd.f32 %v1751_v17, %v3730_v36 }
 0x738   :  { %1786 = vst [vmem:[%s3868_s5 + $0xa0] sm:$0xff] %v1637_v14  ;;  %1788 = vst [vmem:[%s3868_s5 + $0xb0] sm:$0xff] %v1750_v15 }
 0x739   :  { %1787 = vst [vmem:[%s3868_s5 + $0xa8] sm:$0xff] %v1639_v18  ;;  %1789 = vst [vmem:[%s3868_s5 + $0xb8] sm:$0xff] %v1752_v44  ;;  %v1642_v19 = vpop.f32.mrb[26].mxu1  ;;  %v1755_v22 = vpop.f32.mrb[42].mxu0 }
 0x73a   :  { %v1643_v24 = vadd.f32 %v1642_v19, %v3726_v34  ;;  %v1756_v25 = vadd.f32 %v1755_v22, %v3728_v35  ;;  %v1644_v26 = vpop.f32.mrb[27].mxu1  ;;  %v1757_v27 = vpop.f32.mrb[43].mxu0 }
 0x73b   :  { %v1645_v28 = vadd.f32 %v1644_v26, %v3733_v37  ;;  %v1758_v29 = vadd.f32 %v1757_v27, %v3730_v36 }
 0x73c   :  { %1790 = vst [vmem:[%s3868_s5 + $0xc0] sm:$0xff] %v1643_v24  ;;  %1792 = vst [vmem:[%s3868_s5 + $0xd0] sm:$0xff] %v1756_v25 }
 0x73d   :  { %1791 = vst [vmem:[%s3868_s5 + $0xc8] sm:$0xff] %v1645_v28  ;;  %1793 = vst [vmem:[%s3868_s5 + $0xd8] sm:$0xff] %v1758_v29  ;;  %v1648_v30 = vpop.f32.mrb[28].mxu1  ;;  %v1761_v31 = vpop.f32.mrb[44].mxu0 }
 0x73e   :  { %v1649_v32 = vadd.f32 %v1648_v30, %v3726_v34  ;;  %v1762_v33 = vadd.f32 %v1761_v31, %v3728_v35  ;;  %v1650_v38 = vpop.f32.mrb[29].mxu1  ;;  %v1763_v39 = vpop.f32.mrb[45].mxu0 }
 0x73f   :  { %v1651_v40 = vadd.f32 %v1650_v38, %v3733_v37  ;;  %v1764_v41 = vadd.f32 %v1763_v39, %v3730_v36 }
 0x740   :  { %1794 = vst [vmem:[%s3868_s5 + $0xe0] sm:$0xff] %v1649_v32  ;;  %1796 = vst [vmem:[%s3868_s5 + $0xf0] sm:$0xff] %v1762_v33 }
 0x741   :  { %1795 = vst [vmem:[%s3868_s5 + $0xe8] sm:$0xff] %v1651_v40  ;;  %1797 = vst [vmem:[%s3868_s5 + $0xf8] sm:$0xff] %v1764_v41 }

</bundles_post_ra>
